<compile_context>
chip_gen: v7x
topology: tpu7x:2x2x1
jax: 0.10.0
libtpu: 0.0.40
codegen_flags: <defaults>
</compile_context>

<pallas_src>
import math

import jax
import jax.numpy as jnp
from jax.experimental import pallas as pl
from jax.experimental.pallas import tpu as pltpu


# ----------------------------------------------------------------------------
# Generation-aware VMEM / tiling configuration
# ----------------------------------------------------------------------------

def _tpu_vmem_bytes():
    try:
        info = pltpu.get_tpu_info()
        cap = getattr(info, "vmem_capacity_bytes", None)
        if cap:
            return int(cap)
    except Exception:
        pass
    return 64 * 1024 * 1024  # conservative fallback (v7x-sized)


_VMEM_PHYS = _tpu_vmem_bytes()
if _VMEM_PHYS >= 100 * 1024 * 1024:        # v5e / v6e: 128 MiB physical VMEM
    _VMEM_LIMIT = 96 * 1024 * 1024
    _ROW_TILE_CAP = 1024
else:                                      # v7x: 64 MiB physical VMEM
    _VMEM_LIMIT = 52 * 1024 * 1024
    _ROW_TILE_CAP = 512


def _compiler_params(n_axes):
    return pltpu.CompilerParams(
        dimension_semantics=("parallel",) * n_axes,
        vmem_limit_bytes=_VMEM_LIMIT,
    )


def _ffn_row_tile(M, D, F):
    """Row-tile for the FFN kernel from a per-step VMEM byte budget."""
    if M <= _ROW_TILE_CAP:
        return M
    # Resident weights (pipeliner double-buffers them) + small broadcasts.
    weight_bytes = 2 * (2 * D * F * 2) + 2 * (F + 3 * D) * 4
    # Per row: double-buffered x/out f32 blocks + f32 hidden row.
    per_row = 2 * 2 * D * 4 + F * 4
    budget = int(_VMEM_LIMIT * 0.75) - weight_bytes
    tm = min(_ROW_TILE_CAP, max(128, budget // max(per_row, 1)))
    return max(8, (int(tm) // 8) * 8)


# ----------------------------------------------------------------------------
# Kernels
# ----------------------------------------------------------------------------

def _attention_ln_body(x_ref, wq_ref, wk_ref, wv_ref, bqkv_ref, wo_ref,
                       ln1_ref, o_ref, attn_ref):
    """Per batch element: QKV proj + attention + out-proj + residual + LN1.

    x_ref:    (L, D)  f32
    wq/wk/wv: (H, D, E) bf16   (wq, bq pre-scaled by 1/sqrt(E))
    bqkv:     (H, 3, E) f32    rows [bq, bk, bv] per head
    wo:       (H, E, D) bf16   per-head row block of the out projection
    ln1:      (3, D)   f32     rows [bo, gamma1, beta1]
    o_ref:    (L, D)   f32
    attn_ref: (H, L, L) f32 or None
    """
    L, D = x_ref.shape
    H = wq_ref.shape[0]

    x = x_ref[...]                              # (L, D) f32
    xb = x.astype(jnp.bfloat16)

    acc = jnp.zeros((L, D), jnp.float32)        # out-projection accumulator
    for h in range(H):                          # static loop; leading-axis
        bh = bqkv_ref[h]                        # (3, E) f32
        q = jnp.dot(xb, wq_ref[h], preferred_element_type=jnp.float32) + bh[0:1]
        k = jnp.dot(xb, wk_ref[h], preferred_element_type=jnp.float32) + bh[1:2]
        v = jnp.dot(xb, wv_ref[h], preferred_element_type=jnp.float32) + bh[2:3]

        # scores = q @ k^T (scale already folded into wq/bq), f32 accumulation
        s = jax.lax.dot_general(
            q.astype(jnp.bfloat16), k.astype(jnp.bfloat16),
            (((1,), (1,)), ((), ())),
            preferred_element_type=jnp.float32)            # (L, L)

        m = jnp.max(s, axis=-1, keepdims=True)
        p = jnp.exp(s - m)
        l = jnp.sum(p, axis=-1, keepdims=True)
        if attn_ref is not None:
            p = p / l                     # exact probabilities on the debug path
            attn_ref[h] = p
        else:
            p = p * pl.reciprocal(l, approx=True)          # EUP slot, fast path

        ctx = jnp.dot(p.astype(jnp.bfloat16), v.astype(jnp.bfloat16),
                      preferred_element_type=jnp.float32)  # (L, E)
        # Per-head slice of the output projection; ctx_h dies right here.
        acc = acc + jnp.dot(ctx.astype(jnp.bfloat16), wo_ref[h],
                            preferred_element_type=jnp.float32)  # (L, D)

    ln1 = ln1_ref[...]                          # (3, D): [bo, gamma1, beta1]
    z = x + acc + ln1[0:1]                      # residual (dropout = identity)
    mu = jnp.mean(z, axis=-1, keepdims=True)
    var = jnp.mean((z - mu) ** 2, axis=-1, keepdims=True)
    o_ref[...] = (z - mu) * jax.lax.rsqrt(var + 1e-5) * ln1[1:2] + ln1[2:3]


def attn_ln_kernel(x_ref, wq_ref, wk_ref, wv_ref, bqkv_ref, wo_ref, ln1_ref,
                   o_ref):
    _attention_ln_body(x_ref, wq_ref, wk_ref, wv_ref, bqkv_ref, wo_ref,
                       ln1_ref, o_ref, None)


def attn_ln_kernel_with_probs(x_ref, wq_ref, wk_ref, wv_ref, bqkv_ref, wo_ref,
                              ln1_ref, o_ref, attn_ref):
    _attention_ln_body(x_ref, wq_ref, wk_ref, wv_ref, bqkv_ref, wo_ref,
                       ln1_ref, o_ref, attn_ref)


def ffn_add_ln_kernel(x_ref, w1_ref, b1_ref, w2_ref, ln2_ref, o_ref):
    """conv1(1x1) -> relu -> conv2(1x1) -> +residual -> LayerNorm2.

    x: (TM, D) f32, w1: (D, F) bf16, b1: (1, F) f32, w2: (F, D) bf16,
    ln2: (3, D) f32 rows [b2, gamma2, beta2].
    """
    x = x_ref[...]
    h = jnp.dot(x.astype(jnp.bfloat16), w1_ref[...],
                preferred_element_type=jnp.float32) + b1_ref[...]
    h = jnp.maximum(h, 0.0)                     # activation='relu'
    y = jnp.dot(h.astype(jnp.bfloat16), w2_ref[...],
                preferred_element_type=jnp.float32)
    ln2 = ln2_ref[...]                          # (3, D): [b2, gamma2, beta2]
    z = x + y + ln2[0:1]                        # residual (dropout = identity)
    mu = jnp.mean(z, axis=-1, keepdims=True)
    var = jnp.mean((z - mu) ** 2, axis=-1, keepdims=True)
    o_ref[...] = (z - mu) * jax.lax.rsqrt(var + 1e-5) * ln2[1:2] + ln2[2:3]


# ----------------------------------------------------------------------------
# Pallas wrappers
# ----------------------------------------------------------------------------

def pallas_attention_ln(x, wq_hm, wk_hm, wv_hm, bqkv_hm, wo_hm, ln1_pack,
                        output_attention):
    B, L, D = x.shape
    H, _, E = wq_hm.shape

    in_specs = [
        pl.BlockSpec((None, L, D), lambda b: (b, 0, 0)),     # x per batch
        pl.BlockSpec((H, D, E), lambda b: (0, 0, 0)),        # wq (resident)
        pl.BlockSpec((H, D, E), lambda b: (0, 0, 0)),        # wk
        pl.BlockSpec((H, D, E), lambda b: (0, 0, 0)),        # wv
        pl.BlockSpec((H, 3, E), lambda b: (0, 0, 0)),        # packed qkv biases
        pl.BlockSpec((H, E, D), lambda b: (0, 0, 0)),        # wo (head-major)
        pl.BlockSpec((3, D), lambda b: (0, 0)),              # [bo|gamma1|beta1]
    ]
    x1_spec = pl.BlockSpec((None, L, D), lambda b: (b, 0, 0))
    # NOTE(v7x): grid=(B,) "parallel" shards batches across the 2 TensorCores;
    # a second parallel axis (query tiles) would help only for small/odd B.
    params = _compiler_params(1)

    if output_attention:
        x1, attn = pl.pallas_call(
            attn_ln_kernel_with_probs,
            out_shape=(jax.ShapeDtypeStruct((B, L, D), jnp.float32),
                       jax.ShapeDtypeStruct((B, H, L, L), jnp.float32)),
            grid=(B,),
            in_specs=in_specs,
            out_specs=(x1_spec,
                       pl.BlockSpec((None, H, L, L), lambda b: (b, 0, 0, 0))),
            compiler_params=params,
        )(x, wq_hm, wk_hm, wv_hm, bqkv_hm, wo_hm, ln1_pack)
        return x1, attn

    x1 = pl.pallas_call(
        attn_ln_kernel,
        out_shape=jax.ShapeDtypeStruct((B, L, D), jnp.float32),
        grid=(B,),
        in_specs=in_specs,
        out_specs=x1_spec,
        compiler_params=params,
    )(x, wq_hm, wk_hm, wv_hm, bqkv_hm, wo_hm, ln1_pack)
    return x1, None


def pallas_ffn_ln(x2d, w1_bf16, b1, w2_bf16, ln2_pack):
    M, D = x2d.shape
    F = w1_bf16.shape[1]
    TM = _ffn_row_tile(M, D, F)
    return pl.pallas_call(
        ffn_add_ln_kernel,
        out_shape=jax.ShapeDtypeStruct((M, D), jnp.float32),
        grid=(pl.cdiv(M, TM),),
        in_specs=[
            pl.BlockSpec((TM, D), lambda i: (i, 0)),
            pl.BlockSpec((D, F), lambda i: (0, 0)),          # weights resident
            pl.BlockSpec((1, F), lambda i: (0, 0)),
            pl.BlockSpec((F, D), lambda i: (0, 0)),
            pl.BlockSpec((3, D), lambda i: (0, 0)),           # [b2|gamma2|beta2]
        ],
        out_specs=pl.BlockSpec((TM, D), lambda i: (i, 0)),
        compiler_params=_compiler_params(1),
    )(x2d, w1_bf16, b1.reshape(1, F), w2_bf16, ln2_pack)


# ----------------------------------------------------------------------------
# Parameter fusion + EncoderLayer forward
# ----------------------------------------------------------------------------

def fuse_params(params, n_heads):
    """One-time prep: head-major weights, folded softmax scale, packed biases,
    MXU weights pre-cast to bf16."""
    D = params["wq"].shape[0]
    H = n_heads
    E = D // H
    scale = 1.0 / math.sqrt(E)

    def head_major_cols(w):                     # (D, D) -> (H, D, E)
        return jnp.transpose(w.reshape(D, H, E), (1, 0, 2))

    wq_hm = head_major_cols(params["wq"]) * scale        # fold softmax scale
    wk_hm = head_major_cols(params["wk"])
    wv_hm = head_major_cols(params["wv"])
    bq = params["bq"].reshape(H, E) * scale
    bk = params["bk"].reshape(H, E)
    bv = params["bv"].reshape(H, E)

    return dict(
        wq_hm=wq_hm.astype(jnp.bfloat16),
        wk_hm=wk_hm.astype(jnp.bfloat16),
        wv_hm=wv_hm.astype(jnp.bfloat16),
        bqkv_hm=jnp.stack([bq, bk, bv], axis=1).astype(jnp.float32),  # (H,3,E)
        wo_hm=params["wo"].reshape(H, E, D).astype(jnp.bfloat16),     # (H,E,D)
        ln1_pack=jnp.stack(
            [params["bo"], params["ln1_g"], params["ln1_b"]], axis=0
        ).astype(jnp.float32),                                        # (3,D)
        w1_bf16=params["w1"].astype(jnp.bfloat16),
        b1=params["b1"].astype(jnp.float32),
        w2_bf16=params["w2"].astype(jnp.bfloat16),
        ln2_pack=jnp.stack(
            [params["b2"], params["ln2_g"], params["ln2_b"]], axis=0
        ).astype(jnp.float32),                                        # (3,D)
    )


def encoder_layer_forward(x, fparams, n_heads, output_attention=False):
    B, L, D = x.shape

    # --- fused QKV proj + attention + out proj + residual + LayerNorm1 ---
    x1, attn = pallas_attention_ln(
        x, fparams["wq_hm"], fparams["wk_hm"], fparams["wv_hm"],
        fparams["bqkv_hm"], fparams["wo_hm"], fparams["ln1_pack"],
        output_attention)

    # --- conv1(1x1) -> relu -> conv2(1x1) + residual + LayerNorm2 (fused) ---
    out = pallas_ffn_ln(x1.reshape(B * L, D), fparams["w1_bf16"],
                        fparams["b1"], fparams["w2_bf16"], fparams["ln2_pack"])

    return out.reshape(B, L, D), attn


# ----------------------------------------------------------------------------
# Init + pure-JAX reference (for correctness validation)
# ----------------------------------------------------------------------------

def init_params(key, d_model, d_ff, n_heads):
    """Deterministic init matching PyTorch shapes (Linear / Conv1d k=1 as matmul)."""
    def lin(k, fan_in, fan_out):
        k1, k2 = jax.random.split(k)
        bound = 1.0 / math.sqrt(fan_in)
        w = jax.random.uniform(k1, (fan_in, fan_out), jnp.float32, -bound, bound)
        b = jax.random.uniform(k2, (fan_out,), jnp.float32, -bound, bound)
        return w, b

    keys = jax.random.split(key, 6)
    wq, bq = lin(keys[0], d_model, d_model)
    wk, bk = lin(keys[1], d_model, d_model)
    wv, bv = lin(keys[2], d_model, d_model)
    wo, bo = lin(keys[3], d_model, d_model)
    w1, b1 = lin(keys[4], d_model, d_ff)   # conv1 (d_ff, d_model, 1) -> (d_model, d_ff)
    w2, b2 = lin(keys[5], d_ff, d_model)   # conv2 (d_model, d_ff, 1) -> (d_ff, d_model)

    return dict(
        wq=wq, bq=bq, wk=wk, bk=bk, wv=wv, bv=bv, wo=wo, bo=bo,
        w1=w1, b1=b1, w2=w2, b2=b2,
        ln1_g=jnp.ones((d_model,), jnp.float32),
        ln1_b=jnp.zeros((d_model,), jnp.float32),
        ln2_g=jnp.ones((d_model,), jnp.float32),
        ln2_b=jnp.zeros((d_model,), jnp.float32),
    )


def reference_forward(x, params, n_heads):
    """f32 reference matching the PyTorch EncoderLayer (dropout = identity)."""
    B, L, D = x.shape
    H = n_heads
    E = D // H
    q = (x @ params["wq"] + params["bq"]).reshape(B, L, H, E)
    k = (x @ params["wk"] + params["bk"]).reshape(B, L, H, E)
    v = (x @ params["wv"] + params["bv"]).reshape(B, L, H, E)
    s = jnp.einsum("blhe,bshe->bhls", q, k) / math.sqrt(E)
    a = jax.nn.softmax(s, axis=-1)
    ctx = jnp.einsum("bhls,bshe->blhe", a, v).reshape(B, L, D)
    z = x + (ctx @ params["wo"] + params["bo"])
    mu = z.mean(-1, keepdims=True)
    var = ((z - mu) ** 2).mean(-1, keepdims=True)
    x1 = (z - mu) / jnp.sqrt(var + 1e-5) * params["ln1_g"] + params["ln1_b"]
    h = jnp.maximum(x1 @ params["w1"] + params["b1"], 0.0)
    y = h @ params["w2"] + params["b2"]
    z2 = x1 + y
    mu2 = z2.mean(-1, keepdims=True)
    var2 = ((z2 - mu2) ** 2).mean(-1, keepdims=True)
    out = (z2 - mu2) / jnp.sqrt(var2 + 1e-5) * params["ln2_g"] + params["ln2_b"]
    return out, a


if __name__ == "__main__":
    B, L, d_model, n_heads = 2, 8, 32, 4
    d_ff = 4 * d_model  # d_ff defaults to 4 * d_model

    key = jax.random.PRNGKey(0)
    kx, kp = jax.random.split(key)
    x = jax.random.normal(kx, (B, L, d_model), dtype=jnp.float32)
    params = init_params(kp, d_model, d_ff, n_heads)
    fparams = fuse_params(params, n_heads)

    # Debug path: attention probabilities materialized (exact softmax norm).
    out, attn = encoder_layer_forward(x, fparams, n_heads, output_attention=True)
    jax.block_until_ready((out, attn))
    assert out.shape == (B, L, d_model)
    assert attn.shape == (B, n_heads, L, L)

    # Fast path: no (B, H, L, L) HBM write (attn is None, TSLib eval default).
    out2, attn2 = encoder_layer_forward(x, fparams, n_heads, output_attention=False)
    jax.block_until_ready(out2)
    assert out2.shape == (B, L, d_model)
    assert attn2 is None

    # Numerical check against the f32 reference (bf16 MXU feeds -> loose tol).
    ref_out, ref_attn = reference_forward(x, params, n_heads)
    assert jnp.allclose(out, ref_out, atol=5e-2, rtol=5e-2)
    assert jnp.allclose(attn, ref_attn, atol=2e-2, rtol=2e-2)

    print("KERNEL_OK")
</pallas_src>

<mosaic_0001>
module attributes {stable_mosaic.version = 11 : i64} {
  func.func @attn_ln_kernel_with_probs(%arg0: i32, %arg1: memref<1x8x32xf32, #tpu.memory_space<vmem>>, %arg2: memref<4x32x8xbf16, #tpu.memory_space<vmem>>, %arg3: memref<4x32x8xbf16, #tpu.memory_space<vmem>>, %arg4: memref<4x32x8xbf16, #tpu.memory_space<vmem>>, %arg5: memref<4x3x8xf32, #tpu.memory_space<vmem>>, %arg6: memref<4x8x32xbf16, #tpu.memory_space<vmem>>, %arg7: memref<3x32xf32, #tpu.memory_space<vmem>>, %arg8: memref<1x8x32xf32, #tpu.memory_space<vmem>>, %arg9: memref<1x4x8x8xf32, #tpu.memory_space<vmem>>) attributes {dimension_semantics = [#tpu.dimension_semantics<parallel>], iteration_bounds = array<i64: 2>, scalar_prefetch = 0 : i64, scratch_operands = 0 : i64, tpu.core_type = #tpu.core_type<tc>, window_params = [{transform_indices = @transform_0, window_bounds = array<i64: 1, 8, 32>}, {pipeline_mode = #tpu.pipeline_mode<synchronous>, transform_indices = @transform_1, window_bounds = array<i64: 4, 32, 8>}, {pipeline_mode = #tpu.pipeline_mode<synchronous>, transform_indices = @transform_2, window_bounds = array<i64: 4, 32, 8>}, {pipeline_mode = #tpu.pipeline_mode<synchronous>, transform_indices = @transform_3, window_bounds = array<i64: 4, 32, 8>}, {pipeline_mode = #tpu.pipeline_mode<synchronous>, transform_indices = @transform_4, window_bounds = array<i64: 4, 3, 8>}, {pipeline_mode = #tpu.pipeline_mode<synchronous>, transform_indices = @transform_5, window_bounds = array<i64: 4, 8, 32>}, {pipeline_mode = #tpu.pipeline_mode<synchronous>, transform_indices = @transform_6, window_bounds = array<i64: 3, 32>}, {transform_indices = @transform_7, window_bounds = array<i64: 1, 8, 32>}, {transform_indices = @transform_8, window_bounds = array<i64: 1, 4, 8, 8>}]} {
    %c0 = arith.constant 0 : index
    %c0_0 = arith.constant 0 : index
    %c0_1 = arith.constant 0 : index
    %0 = vector.load %arg1[%c0, %c0_0, %c0_1] : memref<1x8x32xf32, #tpu.memory_space<vmem>>, vector<1x8x32xf32>
    %1 = vector.shape_cast %0 : vector<1x8x32xf32> to vector<8x32xf32>
    %2 = arith.truncf %1 : vector<8x32xf32> to vector<8x32xbf16>
    %cst = arith.constant 0.000000e+00 : f32
    %3 = vector.broadcast %cst : f32 to vector<8x32xf32>
    %c0_2 = arith.constant 0 : index
    %c0_3 = arith.constant 0 : index
    %c0_4 = arith.constant 0 : index
    %4 = vector.load %arg5[%c0_2, %c0_3, %c0_4] : memref<4x3x8xf32, #tpu.memory_space<vmem>>, vector<1x3x8xf32>
    %5 = vector.shape_cast %4 : vector<1x3x8xf32> to vector<3x8xf32>
    %c0_5 = arith.constant 0 : index
    %c0_6 = arith.constant 0 : index
    %c0_7 = arith.constant 0 : index
    %6 = vector.load %arg2[%c0_5, %c0_6, %c0_7] : memref<4x32x8xbf16, #tpu.memory_space<vmem>>, vector<1x32x8xbf16>
    %7 = vector.shape_cast %6 : vector<1x32x8xbf16> to vector<32x8xbf16>
    %cst_8 = arith.constant dense<0.000000e+00> : vector<8x8xf32>
    %8 = tpu.matmul %2, %7, %cst_8 {dimension_numbers = #tpu.dot_dimension_numbers<[1], [0], [0], [1], [0, 0, 1, 1], [], []>} : vector<8x32xbf16>, vector<32x8xbf16>, vector<8x8xf32> -> vector<8x8xf32>
    %9 = vector.extract_strided_slice %5 {offsets = [0, 0], sizes = [1, 8], strides = [1, 1]} : vector<3x8xf32> to vector<1x8xf32>
    %10 = vector.broadcast %9 : vector<1x8xf32> to vector<8x8xf32>
    %11 = arith.addf %8, %10 : vector<8x8xf32>
    %c0_9 = arith.constant 0 : index
    %c0_10 = arith.constant 0 : index
    %c0_11 = arith.constant 0 : index
    %12 = vector.load %arg3[%c0_9, %c0_10, %c0_11] : memref<4x32x8xbf16, #tpu.memory_space<vmem>>, vector<1x32x8xbf16>
    %13 = vector.shape_cast %12 : vector<1x32x8xbf16> to vector<32x8xbf16>
    %cst_12 = arith.constant dense<0.000000e+00> : vector<8x8xf32>
    %14 = tpu.matmul %2, %13, %cst_12 {dimension_numbers = #tpu.dot_dimension_numbers<[1], [0], [0], [1], [0, 0, 1, 1], [], []>} : vector<8x32xbf16>, vector<32x8xbf16>, vector<8x8xf32> -> vector<8x8xf32>
    %15 = vector.extract_strided_slice %5 {offsets = [1, 0], sizes = [1, 8], strides = [1, 1]} : vector<3x8xf32> to vector<1x8xf32>
    %16 = vector.broadcast %15 : vector<1x8xf32> to vector<8x8xf32>
    %17 = arith.addf %14, %16 : vector<8x8xf32>
    %c0_13 = arith.constant 0 : index
    %c0_14 = arith.constant 0 : index
    %c0_15 = arith.constant 0 : index
    %18 = vector.load %arg4[%c0_13, %c0_14, %c0_15] : memref<4x32x8xbf16, #tpu.memory_space<vmem>>, vector<1x32x8xbf16>
    %19 = vector.shape_cast %18 : vector<1x32x8xbf16> to vector<32x8xbf16>
    %cst_16 = arith.constant dense<0.000000e+00> : vector<8x8xf32>
    %20 = tpu.matmul %2, %19, %cst_16 {dimension_numbers = #tpu.dot_dimension_numbers<[1], [0], [0], [1], [0, 0, 1, 1], [], []>} : vector<8x32xbf16>, vector<32x8xbf16>, vector<8x8xf32> -> vector<8x8xf32>
    %21 = vector.extract_strided_slice %5 {offsets = [2, 0], sizes = [1, 8], strides = [1, 1]} : vector<3x8xf32> to vector<1x8xf32>
    %22 = vector.broadcast %21 : vector<1x8xf32> to vector<8x8xf32>
    %23 = arith.addf %20, %22 : vector<8x8xf32>
    %24 = arith.truncf %11 : vector<8x8xf32> to vector<8x8xbf16>
    %25 = arith.truncf %17 : vector<8x8xf32> to vector<8x8xbf16>
    %cst_17 = arith.constant dense<0.000000e+00> : vector<8x8xf32>
    %26 = tpu.matmul %24, %25, %cst_17 {dimension_numbers = #tpu.dot_dimension_numbers<[1], [1], [0], [0], [0, 0, 1, 0], [], []>} : vector<8x8xbf16>, vector<8x8xbf16>, vector<8x8xf32> -> vector<8x8xf32>
    %cst_18 = arith.constant dense<0xFF800000> : vector<8xf32>
    %27 = vector.multi_reduction <maximumf>, %26, %cst_18 [1] : vector<8x8xf32> to vector<8xf32>
    %28 = vector.shape_cast %27 : vector<8xf32> to vector<8x1xf32>
    %29 = vector.broadcast %28 : vector<8x1xf32> to vector<8x8xf32>
    %30 = arith.subf %26, %29 : vector<8x8xf32>
    %31 = math.exp %30 : vector<8x8xf32>
    %cst_19 = arith.constant dense<0.000000e+00> : vector<8xf32>
    %32 = vector.multi_reduction <add>, %31, %cst_19 [1] : vector<8x8xf32> to vector<8xf32>
    %33 = vector.shape_cast %32 : vector<8xf32> to vector<8x1xf32>
    %34 = vector.broadcast %33 : vector<8x1xf32> to vector<8x8xf32>
    %35 = arith.divf %31, %34 : vector<8x8xf32>
    %c0_20 = arith.constant 0 : index
    %c0_21 = arith.constant 0 : index
    %c0_22 = arith.constant 0 : index
    %c0_23 = arith.constant 0 : index
    %36 = vector.load %arg9[%c0_20, %c0_21, %c0_22, %c0_23] : memref<1x4x8x8xf32, #tpu.memory_space<vmem>>, vector<1x1x8x8xf32>
    %37 = vector.shape_cast %36 : vector<1x1x8x8xf32> to vector<8x8xf32>
    %38 = vector.shape_cast %35 : vector<8x8xf32> to vector<1x1x8x8xf32>
    tpu.vector_store %arg9[%c0_20, %c0_21, %c0_22, %c0_23], %38 {strides = array<i32>} : memref<1x4x8x8xf32, #tpu.memory_space<vmem>>, vector<1x1x8x8xf32>,
    %39 = arith.truncf %35 : vector<8x8xf32> to vector<8x8xbf16>
    %40 = arith.truncf %23 : vector<8x8xf32> to vector<8x8xbf16>
    %cst_24 = arith.constant dense<0.000000e+00> : vector<8x8xf32>
    %41 = tpu.matmul %39, %40, %cst_24 {dimension_numbers = #tpu.dot_dimension_numbers<[1], [0], [0], [1], [0, 0, 1, 1], [], []>} : vector<8x8xbf16>, vector<8x8xbf16>, vector<8x8xf32> -> vector<8x8xf32>
    %42 = arith.truncf %41 : vector<8x8xf32> to vector<8x8xbf16>
    %c0_25 = arith.constant 0 : index
    %c0_26 = arith.constant 0 : index
    %c0_27 = arith.constant 0 : index
    %43 = vector.load %arg6[%c0_25, %c0_26, %c0_27] : memref<4x8x32xbf16, #tpu.memory_space<vmem>>, vector<1x8x32xbf16>
    %44 = vector.shape_cast %43 : vector<1x8x32xbf16> to vector<8x32xbf16>
    %cst_28 = arith.constant dense<0.000000e+00> : vector<8x32xf32>
    %45 = tpu.matmul %42, %44, %cst_28 {dimension_numbers = #tpu.dot_dimension_numbers<[1], [0], [0], [1], [0, 0, 1, 1], [], []>} : vector<8x8xbf16>, vector<8x32xbf16>, vector<8x32xf32> -> vector<8x32xf32>
    %46 = arith.addf %3, %45 : vector<8x32xf32>
    %c1 = arith.constant 1 : index
    %c0_29 = arith.constant 0 : index
    %c0_30 = arith.constant 0 : index
    %47 = vector.load %arg5[%c1, %c0_29, %c0_30] : memref<4x3x8xf32, #tpu.memory_space<vmem>>, vector<1x3x8xf32>
    %48 = vector.shape_cast %47 : vector<1x3x8xf32> to vector<3x8xf32>
    %c1_31 = arith.constant 1 : index
    %c0_32 = arith.constant 0 : index
    %c0_33 = arith.constant 0 : index
    %49 = vector.load %arg2[%c1_31, %c0_32, %c0_33] : memref<4x32x8xbf16, #tpu.memory_space<vmem>>, vector<1x32x8xbf16>
    %50 = vector.shape_cast %49 : vector<1x32x8xbf16> to vector<32x8xbf16>
    %cst_34 = arith.constant dense<0.000000e+00> : vector<8x8xf32>
    %51 = tpu.matmul %2, %50, %cst_34 {dimension_numbers = #tpu.dot_dimension_numbers<[1], [0], [0], [1], [0, 0, 1, 1], [], []>} : vector<8x32xbf16>, vector<32x8xbf16>, vector<8x8xf32> -> vector<8x8xf32>
    %52 = vector.extract_strided_slice %48 {offsets = [0, 0], sizes = [1, 8], strides = [1, 1]} : vector<3x8xf32> to vector<1x8xf32>
    %53 = vector.broadcast %52 : vector<1x8xf32> to vector<8x8xf32>
    %54 = arith.addf %51, %53 : vector<8x8xf32>
    %c1_35 = arith.constant 1 : index
    %c0_36 = arith.constant 0 : index
    %c0_37 = arith.constant 0 : index
    %55 = vector.load %arg3[%c1_35, %c0_36, %c0_37] : memref<4x32x8xbf16, #tpu.memory_space<vmem>>, vector<1x32x8xbf16>
    %56 = vector.shape_cast %55 : vector<1x32x8xbf16> to vector<32x8xbf16>
    %cst_38 = arith.constant dense<0.000000e+00> : vector<8x8xf32>
    %57 = tpu.matmul %2, %56, %cst_38 {dimension_numbers = #tpu.dot_dimension_numbers<[1], [0], [0], [1], [0, 0, 1, 1], [], []>} : vector<8x32xbf16>, vector<32x8xbf16>, vector<8x8xf32> -> vector<8x8xf32>
    %58 = vector.extract_strided_slice %48 {offsets = [1, 0], sizes = [1, 8], strides = [1, 1]} : vector<3x8xf32> to vector<1x8xf32>
    %59 = vector.broadcast %58 : vector<1x8xf32> to vector<8x8xf32>
    %60 = arith.addf %57, %59 : vector<8x8xf32>
    %c1_39 = arith.constant 1 : index
    %c0_40 = arith.constant 0 : index
    %c0_41 = arith.constant 0 : index
    %61 = vector.load %arg4[%c1_39, %c0_40, %c0_41] : memref<4x32x8xbf16, #tpu.memory_space<vmem>>, vector<1x32x8xbf16>
    %62 = vector.shape_cast %61 : vector<1x32x8xbf16> to vector<32x8xbf16>
    %cst_42 = arith.constant dense<0.000000e+00> : vector<8x8xf32>
    %63 = tpu.matmul %2, %62, %cst_42 {dimension_numbers = #tpu.dot_dimension_numbers<[1], [0], [0], [1], [0, 0, 1, 1], [], []>} : vector<8x32xbf16>, vector<32x8xbf16>, vector<8x8xf32> -> vector<8x8xf32>
    %64 = vector.extract_strided_slice %48 {offsets = [2, 0], sizes = [1, 8], strides = [1, 1]} : vector<3x8xf32> to vector<1x8xf32>
    %65 = vector.broadcast %64 : vector<1x8xf32> to vector<8x8xf32>
    %66 = arith.addf %63, %65 : vector<8x8xf32>
    %67 = arith.truncf %54 : vector<8x8xf32> to vector<8x8xbf16>
    %68 = arith.truncf %60 : vector<8x8xf32> to vector<8x8xbf16>
    %cst_43 = arith.constant dense<0.000000e+00> : vector<8x8xf32>
    %69 = tpu.matmul %67, %68, %cst_43 {dimension_numbers = #tpu.dot_dimension_numbers<[1], [1], [0], [0], [0, 0, 1, 0], [], []>} : vector<8x8xbf16>, vector<8x8xbf16>, vector<8x8xf32> -> vector<8x8xf32>
    %cst_44 = arith.constant dense<0xFF800000> : vector<8xf32>
    %70 = vector.multi_reduction <maximumf>, %69, %cst_44 [1] : vector<8x8xf32> to vector<8xf32>
    %71 = vector.shape_cast %70 : vector<8xf32> to vector<8x1xf32>
    %72 = vector.broadcast %71 : vector<8x1xf32> to vector<8x8xf32>
    %73 = arith.subf %69, %72 : vector<8x8xf32>
    %74 = math.exp %73 : vector<8x8xf32>
    %cst_45 = arith.constant dense<0.000000e+00> : vector<8xf32>
    %75 = vector.multi_reduction <add>, %74, %cst_45 [1] : vector<8x8xf32> to vector<8xf32>
    %76 = vector.shape_cast %75 : vector<8xf32> to vector<8x1xf32>
    %77 = vector.broadcast %76 : vector<8x1xf32> to vector<8x8xf32>
    %78 = arith.divf %74, %77 : vector<8x8xf32>
    %c0_46 = arith.constant 0 : index
    %c1_47 = arith.constant 1 : index
    %c0_48 = arith.constant 0 : index
    %c0_49 = arith.constant 0 : index
    %79 = vector.load %arg9[%c0_46, %c1_47, %c0_48, %c0_49] : memref<1x4x8x8xf32, #tpu.memory_space<vmem>>, vector<1x1x8x8xf32>
    %80 = vector.shape_cast %79 : vector<1x1x8x8xf32> to vector<8x8xf32>
    %81 = vector.shape_cast %78 : vector<8x8xf32> to vector<1x1x8x8xf32>
    tpu.vector_store %arg9[%c0_46, %c1_47, %c0_48, %c0_49], %81 {strides = array<i32>} : memref<1x4x8x8xf32, #tpu.memory_space<vmem>>, vector<1x1x8x8xf32>,
    %82 = arith.truncf %78 : vector<8x8xf32> to vector<8x8xbf16>
    %83 = arith.truncf %66 : vector<8x8xf32> to vector<8x8xbf16>
    %cst_50 = arith.constant dense<0.000000e+00> : vector<8x8xf32>
    %84 = tpu.matmul %82, %83, %cst_50 {dimension_numbers = #tpu.dot_dimension_numbers<[1], [0], [0], [1], [0, 0, 1, 1], [], []>} : vector<8x8xbf16>, vector<8x8xbf16>, vector<8x8xf32> -> vector<8x8xf32>
    %85 = arith.truncf %84 : vector<8x8xf32> to vector<8x8xbf16>
    %c1_51 = arith.constant 1 : index
    %c0_52 = arith.constant 0 : index
    %c0_53 = arith.constant 0 : index
    %86 = vector.load %arg6[%c1_51, %c0_52, %c0_53] : memref<4x8x32xbf16, #tpu.memory_space<vmem>>, vector<1x8x32xbf16>
    %87 = vector.shape_cast %86 : vector<1x8x32xbf16> to vector<8x32xbf16>
    %cst_54 = arith.constant dense<0.000000e+00> : vector<8x32xf32>
    %88 = tpu.matmul %85, %87, %cst_54 {dimension_numbers = #tpu.dot_dimension_numbers<[1], [0], [0], [1], [0, 0, 1, 1], [], []>} : vector<8x8xbf16>, vector<8x32xbf16>, vector<8x32xf32> -> vector<8x32xf32>
    %89 = arith.addf %46, %88 : vector<8x32xf32>
    %c2 = arith.constant 2 : index
    %c0_55 = arith.constant 0 : index
    %c0_56 = arith.constant 0 : index
    %90 = vector.load %arg5[%c2, %c0_55, %c0_56] : memref<4x3x8xf32, #tpu.memory_space<vmem>>, vector<1x3x8xf32>
    %91 = vector.shape_cast %90 : vector<1x3x8xf32> to vector<3x8xf32>
    %c2_57 = arith.constant 2 : index
    %c0_58 = arith.constant 0 : index
    %c0_59 = arith.constant 0 : index
    %92 = vector.load %arg2[%c2_57, %c0_58, %c0_59] : memref<4x32x8xbf16, #tpu.memory_space<vmem>>, vector<1x32x8xbf16>
    %93 = vector.shape_cast %92 : vector<1x32x8xbf16> to vector<32x8xbf16>
    %cst_60 = arith.constant dense<0.000000e+00> : vector<8x8xf32>
    %94 = tpu.matmul %2, %93, %cst_60 {dimension_numbers = #tpu.dot_dimension_numbers<[1], [0], [0], [1], [0, 0, 1, 1], [], []>} : vector<8x32xbf16>, vector<32x8xbf16>, vector<8x8xf32> -> vector<8x8xf32>
    %95 = vector.extract_strided_slice %91 {offsets = [0, 0], sizes = [1, 8], strides = [1, 1]} : vector<3x8xf32> to vector<1x8xf32>
    %96 = vector.broadcast %95 : vector<1x8xf32> to vector<8x8xf32>
    %97 = arith.addf %94, %96 : vector<8x8xf32>
    %c2_61 = arith.constant 2 : index
    %c0_62 = arith.constant 0 : index
    %c0_63 = arith.constant 0 : index
    %98 = vector.load %arg3[%c2_61, %c0_62, %c0_63] : memref<4x32x8xbf16, #tpu.memory_space<vmem>>, vector<1x32x8xbf16>
    %99 = vector.shape_cast %98 : vector<1x32x8xbf16> to vector<32x8xbf16>
    %cst_64 = arith.constant dense<0.000000e+00> : vector<8x8xf32>
    %100 = tpu.matmul %2, %99, %cst_64 {dimension_numbers = #tpu.dot_dimension_numbers<[1], [0], [0], [1], [0, 0, 1, 1], [], []>} : vector<8x32xbf16>, vector<32x8xbf16>, vector<8x8xf32> -> vector<8x8xf32>
    %101 = vector.extract_strided_slice %91 {offsets = [1, 0], sizes = [1, 8], strides = [1, 1]} : vector<3x8xf32> to vector<1x8xf32>
    %102 = vector.broadcast %101 : vector<1x8xf32> to vector<8x8xf32>
    %103 = arith.addf %100, %102 : vector<8x8xf32>
    %c2_65 = arith.constant 2 : index
    %c0_66 = arith.constant 0 : index
    %c0_67 = arith.constant 0 : index
    %104 = vector.load %arg4[%c2_65, %c0_66, %c0_67] : memref<4x32x8xbf16, #tpu.memory_space<vmem>>, vector<1x32x8xbf16>
    %105 = vector.shape_cast %104 : vector<1x32x8xbf16> to vector<32x8xbf16>
    %cst_68 = arith.constant dense<0.000000e+00> : vector<8x8xf32>
    %106 = tpu.matmul %2, %105, %cst_68 {dimension_numbers = #tpu.dot_dimension_numbers<[1], [0], [0], [1], [0, 0, 1, 1], [], []>} : vector<8x32xbf16>, vector<32x8xbf16>, vector<8x8xf32> -> vector<8x8xf32>
    %107 = vector.extract_strided_slice %91 {offsets = [2, 0], sizes = [1, 8], strides = [1, 1]} : vector<3x8xf32> to vector<1x8xf32>
    %108 = vector.broadcast %107 : vector<1x8xf32> to vector<8x8xf32>
    %109 = arith.addf %106, %108 : vector<8x8xf32>
    %110 = arith.truncf %97 : vector<8x8xf32> to vector<8x8xbf16>
    %111 = arith.truncf %103 : vector<8x8xf32> to vector<8x8xbf16>
    %cst_69 = arith.constant dense<0.000000e+00> : vector<8x8xf32>
    %112 = tpu.matmul %110, %111, %cst_69 {dimension_numbers = #tpu.dot_dimension_numbers<[1], [1], [0], [0], [0, 0, 1, 0], [], []>} : vector<8x8xbf16>, vector<8x8xbf16>, vector<8x8xf32> -> vector<8x8xf32>
    %cst_70 = arith.constant dense<0xFF800000> : vector<8xf32>
    %113 = vector.multi_reduction <maximumf>, %112, %cst_70 [1] : vector<8x8xf32> to vector<8xf32>
    %114 = vector.shape_cast %113 : vector<8xf32> to vector<8x1xf32>
    %115 = vector.broadcast %114 : vector<8x1xf32> to vector<8x8xf32>
    %116 = arith.subf %112, %115 : vector<8x8xf32>
    %117 = math.exp %116 : vector<8x8xf32>
    %cst_71 = arith.constant dense<0.000000e+00> : vector<8xf32>
    %118 = vector.multi_reduction <add>, %117, %cst_71 [1] : vector<8x8xf32> to vector<8xf32>
    %119 = vector.shape_cast %118 : vector<8xf32> to vector<8x1xf32>
    %120 = vector.broadcast %119 : vector<8x1xf32> to vector<8x8xf32>
    %121 = arith.divf %117, %120 : vector<8x8xf32>
    %c0_72 = arith.constant 0 : index
    %c2_73 = arith.constant 2 : index
    %c0_74 = arith.constant 0 : index
    %c0_75 = arith.constant 0 : index
    %122 = vector.load %arg9[%c0_72, %c2_73, %c0_74, %c0_75] : memref<1x4x8x8xf32, #tpu.memory_space<vmem>>, vector<1x1x8x8xf32>
    %123 = vector.shape_cast %122 : vector<1x1x8x8xf32> to vector<8x8xf32>
    %124 = vector.shape_cast %121 : vector<8x8xf32> to vector<1x1x8x8xf32>
    tpu.vector_store %arg9[%c0_72, %c2_73, %c0_74, %c0_75], %124 {strides = array<i32>} : memref<1x4x8x8xf32, #tpu.memory_space<vmem>>, vector<1x1x8x8xf32>,
    %125 = arith.truncf %121 : vector<8x8xf32> to vector<8x8xbf16>
    %126 = arith.truncf %109 : vector<8x8xf32> to vector<8x8xbf16>
    %cst_76 = arith.constant dense<0.000000e+00> : vector<8x8xf32>
    %127 = tpu.matmul %125, %126, %cst_76 {dimension_numbers = #tpu.dot_dimension_numbers<[1], [0], [0], [1], [0, 0, 1, 1], [], []>} : vector<8x8xbf16>, vector<8x8xbf16>, vector<8x8xf32> -> vector<8x8xf32>
    %128 = arith.truncf %127 : vector<8x8xf32> to vector<8x8xbf16>
    %c2_77 = arith.constant 2 : index
    %c0_78 = arith.constant 0 : index
    %c0_79 = arith.constant 0 : index
    %129 = vector.load %arg6[%c2_77, %c0_78, %c0_79] : memref<4x8x32xbf16, #tpu.memory_space<vmem>>, vector<1x8x32xbf16>
    %130 = vector.shape_cast %129 : vector<1x8x32xbf16> to vector<8x32xbf16>
    %cst_80 = arith.constant dense<0.000000e+00> : vector<8x32xf32>
    %131 = tpu.matmul %128, %130, %cst_80 {dimension_numbers = #tpu.dot_dimension_numbers<[1], [0], [0], [1], [0, 0, 1, 1], [], []>} : vector<8x8xbf16>, vector<8x32xbf16>, vector<8x32xf32> -> vector<8x32xf32>
    %132 = arith.addf %89, %131 : vector<8x32xf32>
    %c3 = arith.constant 3 : index
    %c0_81 = arith.constant 0 : index
    %c0_82 = arith.constant 0 : index
    %133 = vector.load %arg5[%c3, %c0_81, %c0_82] : memref<4x3x8xf32, #tpu.memory_space<vmem>>, vector<1x3x8xf32>
    %134 = vector.shape_cast %133 : vector<1x3x8xf32> to vector<3x8xf32>
    %c3_83 = arith.constant 3 : index
    %c0_84 = arith.constant 0 : index
    %c0_85 = arith.constant 0 : index
    %135 = vector.load %arg2[%c3_83, %c0_84, %c0_85] : memref<4x32x8xbf16, #tpu.memory_space<vmem>>, vector<1x32x8xbf16>
    %136 = vector.shape_cast %135 : vector<1x32x8xbf16> to vector<32x8xbf16>
    %cst_86 = arith.constant dense<0.000000e+00> : vector<8x8xf32>
    %137 = tpu.matmul %2, %136, %cst_86 {dimension_numbers = #tpu.dot_dimension_numbers<[1], [0], [0], [1], [0, 0, 1, 1], [], []>} : vector<8x32xbf16>, vector<32x8xbf16>, vector<8x8xf32> -> vector<8x8xf32>
    %138 = vector.extract_strided_slice %134 {offsets = [0, 0], sizes = [1, 8], strides = [1, 1]} : vector<3x8xf32> to vector<1x8xf32>
    %139 = vector.broadcast %138 : vector<1x8xf32> to vector<8x8xf32>
    %140 = arith.addf %137, %139 : vector<8x8xf32>
    %c3_87 = arith.constant 3 : index
    %c0_88 = arith.constant 0 : index
    %c0_89 = arith.constant 0 : index
    %141 = vector.load %arg3[%c3_87, %c0_88, %c0_89] : memref<4x32x8xbf16, #tpu.memory_space<vmem>>, vector<1x32x8xbf16>
    %142 = vector.shape_cast %141 : vector<1x32x8xbf16> to vector<32x8xbf16>
    %cst_90 = arith.constant dense<0.000000e+00> : vector<8x8xf32>
    %143 = tpu.matmul %2, %142, %cst_90 {dimension_numbers = #tpu.dot_dimension_numbers<[1], [0], [0], [1], [0, 0, 1, 1], [], []>} : vector<8x32xbf16>, vector<32x8xbf16>, vector<8x8xf32> -> vector<8x8xf32>
    %144 = vector.extract_strided_slice %134 {offsets = [1, 0], sizes = [1, 8], strides = [1, 1]} : vector<3x8xf32> to vector<1x8xf32>
    %145 = vector.broadcast %144 : vector<1x8xf32> to vector<8x8xf32>
    %146 = arith.addf %143, %145 : vector<8x8xf32>
    %c3_91 = arith.constant 3 : index
    %c0_92 = arith.constant 0 : index
    %c0_93 = arith.constant 0 : index
    %147 = vector.load %arg4[%c3_91, %c0_92, %c0_93] : memref<4x32x8xbf16, #tpu.memory_space<vmem>>, vector<1x32x8xbf16>
    %148 = vector.shape_cast %147 : vector<1x32x8xbf16> to vector<32x8xbf16>
    %cst_94 = arith.constant dense<0.000000e+00> : vector<8x8xf32>
    %149 = tpu.matmul %2, %148, %cst_94 {dimension_numbers = #tpu.dot_dimension_numbers<[1], [0], [0], [1], [0, 0, 1, 1], [], []>} : vector<8x32xbf16>, vector<32x8xbf16>, vector<8x8xf32> -> vector<8x8xf32>
    %150 = vector.extract_strided_slice %134 {offsets = [2, 0], sizes = [1, 8], strides = [1, 1]} : vector<3x8xf32> to vector<1x8xf32>
    %151 = vector.broadcast %150 : vector<1x8xf32> to vector<8x8xf32>
    %152 = arith.addf %149, %151 : vector<8x8xf32>
    %153 = arith.truncf %140 : vector<8x8xf32> to vector<8x8xbf16>
    %154 = arith.truncf %146 : vector<8x8xf32> to vector<8x8xbf16>
    %cst_95 = arith.constant dense<0.000000e+00> : vector<8x8xf32>
    %155 = tpu.matmul %153, %154, %cst_95 {dimension_numbers = #tpu.dot_dimension_numbers<[1], [1], [0], [0], [0, 0, 1, 0], [], []>} : vector<8x8xbf16>, vector<8x8xbf16>, vector<8x8xf32> -> vector<8x8xf32>
    %cst_96 = arith.constant dense<0xFF800000> : vector<8xf32>
    %156 = vector.multi_reduction <maximumf>, %155, %cst_96 [1] : vector<8x8xf32> to vector<8xf32>
    %157 = vector.shape_cast %156 : vector<8xf32> to vector<8x1xf32>
    %158 = vector.broadcast %157 : vector<8x1xf32> to vector<8x8xf32>
    %159 = arith.subf %155, %158 : vector<8x8xf32>
    %160 = math.exp %159 : vector<8x8xf32>
    %cst_97 = arith.constant dense<0.000000e+00> : vector<8xf32>
    %161 = vector.multi_reduction <add>, %160, %cst_97 [1] : vector<8x8xf32> to vector<8xf32>
    %162 = vector.shape_cast %161 : vector<8xf32> to vector<8x1xf32>
    %163 = vector.broadcast %162 : vector<8x1xf32> to vector<8x8xf32>
    %164 = arith.divf %160, %163 : vector<8x8xf32>
    %c0_98 = arith.constant 0 : index
    %c3_99 = arith.constant 3 : index
    %c0_100 = arith.constant 0 : index
    %c0_101 = arith.constant 0 : index
    %165 = vector.load %arg9[%c0_98, %c3_99, %c0_100, %c0_101] : memref<1x4x8x8xf32, #tpu.memory_space<vmem>>, vector<1x1x8x8xf32>
    %166 = vector.shape_cast %165 : vector<1x1x8x8xf32> to vector<8x8xf32>
    %167 = vector.shape_cast %164 : vector<8x8xf32> to vector<1x1x8x8xf32>
    tpu.vector_store %arg9[%c0_98, %c3_99, %c0_100, %c0_101], %167 {strides = array<i32>} : memref<1x4x8x8xf32, #tpu.memory_space<vmem>>, vector<1x1x8x8xf32>,
    %168 = arith.truncf %164 : vector<8x8xf32> to vector<8x8xbf16>
    %169 = arith.truncf %152 : vector<8x8xf32> to vector<8x8xbf16>
    %cst_102 = arith.constant dense<0.000000e+00> : vector<8x8xf32>
    %170 = tpu.matmul %168, %169, %cst_102 {dimension_numbers = #tpu.dot_dimension_numbers<[1], [0], [0], [1], [0, 0, 1, 1], [], []>} : vector<8x8xbf16>, vector<8x8xbf16>, vector<8x8xf32> -> vector<8x8xf32>
    %171 = arith.truncf %170 : vector<8x8xf32> to vector<8x8xbf16>
    %c3_103 = arith.constant 3 : index
    %c0_104 = arith.constant 0 : index
    %c0_105 = arith.constant 0 : index
    %172 = vector.load %arg6[%c3_103, %c0_104, %c0_105] : memref<4x8x32xbf16, #tpu.memory_space<vmem>>, vector<1x8x32xbf16>
    %173 = vector.shape_cast %172 : vector<1x8x32xbf16> to vector<8x32xbf16>
    %cst_106 = arith.constant dense<0.000000e+00> : vector<8x32xf32>
    %174 = tpu.matmul %171, %173, %cst_106 {dimension_numbers = #tpu.dot_dimension_numbers<[1], [0], [0], [1], [0, 0, 1, 1], [], []>} : vector<8x8xbf16>, vector<8x32xbf16>, vector<8x32xf32> -> vector<8x32xf32>
    %175 = arith.addf %132, %174 : vector<8x32xf32>
    %c0_107 = arith.constant 0 : index
    %c0_108 = arith.constant 0 : index
    %176 = vector.load %arg7[%c0_107, %c0_108] : memref<3x32xf32, #tpu.memory_space<vmem>>, vector<3x32xf32>
    %177 = arith.addf %1, %175 : vector<8x32xf32>
    %178 = vector.extract_strided_slice %176 {offsets = [0, 0], sizes = [1, 32], strides = [1, 1]} : vector<3x32xf32> to vector<1x32xf32>
    %179 = vector.broadcast %178 : vector<1x32xf32> to vector<8x32xf32>
    %180 = arith.addf %177, %179 : vector<8x32xf32>
    %cst_109 = arith.constant dense<0.000000e+00> : vector<8xf32>
    %181 = vector.multi_reduction <add>, %180, %cst_109 [1] : vector<8x32xf32> to vector<8xf32>
    %182 = vector.shape_cast %181 : vector<8xf32> to vector<8x1xf32>
    %cst_110 = arith.constant 3.200000e+01 : f32
    %183 = vector.broadcast %cst_110 : f32 to vector<8x1xf32>
    %184 = arith.divf %182, %183 : vector<8x1xf32>
    %185 = vector.broadcast %184 : vector<8x1xf32> to vector<8x32xf32>
    %186 = arith.subf %180, %185 : vector<8x32xf32>
    %187 = arith.mulf %186, %186 : vector<8x32xf32>
    %cst_111 = arith.constant dense<0.000000e+00> : vector<8xf32>
    %188 = vector.multi_reduction <add>, %187, %cst_111 [1] : vector<8x32xf32> to vector<8xf32>
    %189 = vector.shape_cast %188 : vector<8xf32> to vector<8x1xf32>
    %cst_112 = arith.constant 3.200000e+01 : f32
    %190 = vector.broadcast %cst_112 : f32 to vector<8x1xf32>
    %191 = arith.divf %189, %190 : vector<8x1xf32>
    %192 = vector.broadcast %184 : vector<8x1xf32> to vector<8x32xf32>
    %193 = arith.subf %180, %192 : vector<8x32xf32>
    %cst_113 = arith.constant 9.99999974E-6 : f32
    %194 = vector.broadcast %cst_113 : f32 to vector<8x1xf32>
    %195 = arith.addf %191, %194 : vector<8x1xf32>
    %196 = math.rsqrt %195 : vector<8x1xf32>
    %197 = vector.broadcast %196 : vector<8x1xf32> to vector<8x32xf32>
    %198 = arith.mulf %193, %197 : vector<8x32xf32>
    %199 = vector.extract_strided_slice %176 {offsets = [1, 0], sizes = [1, 32], strides = [1, 1]} : vector<3x32xf32> to vector<1x32xf32>
    %200 = vector.broadcast %199 : vector<1x32xf32> to vector<8x32xf32>
    %201 = arith.mulf %198, %200 : vector<8x32xf32>
    %202 = vector.extract_strided_slice %176 {offsets = [2, 0], sizes = [1, 32], strides = [1, 1]} : vector<3x32xf32> to vector<1x32xf32>
    %203 = vector.broadcast %202 : vector<1x32xf32> to vector<8x32xf32>
    %204 = arith.addf %201, %203 : vector<8x32xf32>
    %c0_114 = arith.constant 0 : index
    %c0_115 = arith.constant 0 : index
    %c0_116 = arith.constant 0 : index
    %205 = vector.load %arg8[%c0_114, %c0_115, %c0_116] : memref<1x8x32xf32, #tpu.memory_space<vmem>>, vector<1x8x32xf32>
    %206 = vector.shape_cast %205 : vector<1x8x32xf32> to vector<8x32xf32>
    %207 = vector.shape_cast %204 : vector<8x32xf32> to vector<1x8x32xf32>
    tpu.vector_store %arg8[%c0_114, %c0_115, %c0_116], %207 {strides = array<i32>} : memref<1x8x32xf32, #tpu.memory_space<vmem>>, vector<1x8x32xf32>,
    return
  }
  func.func @transform_0(%arg0: i32) -> (i32, i32, i32) {
    %c0_i32 = arith.constant 0 : i32
    %c0_i32_0 = arith.constant 0 : i32
    %c0_i32_1 = arith.constant 0 : i32
    return %arg0, %c0_i32, %c0_i32_0 : i32, i32, i32
  }
  func.func @transform_1(%arg0: i32) -> (i32, i32, i32) {
    %c0_i32 = arith.constant 0 : i32
    %c0_i32_0 = arith.constant 0 : i32
    %c0_i32_1 = arith.constant 0 : i32
    %c0_i32_2 = arith.constant 0 : i32
    return %c0_i32, %c0_i32_0, %c0_i32_1 : i32, i32, i32
  }
  func.func @transform_2(%arg0: i32) -> (i32, i32, i32) {
    %c0_i32 = arith.constant 0 : i32
    %c0_i32_0 = arith.constant 0 : i32
    %c0_i32_1 = arith.constant 0 : i32
    %c0_i32_2 = arith.constant 0 : i32
    return %c0_i32, %c0_i32_0, %c0_i32_1 : i32, i32, i32
  }
  func.func @transform_3(%arg0: i32) -> (i32, i32, i32) {
    %c0_i32 = arith.constant 0 : i32
    %c0_i32_0 = arith.constant 0 : i32
    %c0_i32_1 = arith.constant 0 : i32
    %c0_i32_2 = arith.constant 0 : i32
    return %c0_i32, %c0_i32_0, %c0_i32_1 : i32, i32, i32
  }
  func.func @transform_4(%arg0: i32) -> (i32, i32, i32) {
    %c0_i32 = arith.constant 0 : i32
    %c0_i32_0 = arith.constant 0 : i32
    %c0_i32_1 = arith.constant 0 : i32
    %c0_i32_2 = arith.constant 0 : i32
    return %c0_i32, %c0_i32_0, %c0_i32_1 : i32, i32, i32
  }
  func.func @transform_5(%arg0: i32) -> (i32, i32, i32) {
    %c0_i32 = arith.constant 0 : i32
    %c0_i32_0 = arith.constant 0 : i32
    %c0_i32_1 = arith.constant 0 : i32
    %c0_i32_2 = arith.constant 0 : i32
    return %c0_i32, %c0_i32_0, %c0_i32_1 : i32, i32, i32
  }
  func.func @transform_6(%arg0: i32) -> (i32, i32) {
    %c0_i32 = arith.constant 0 : i32
    %c0_i32_0 = arith.constant 0 : i32
    %c0_i32_1 = arith.constant 0 : i32
    return %c0_i32, %c0_i32_0 : i32, i32
  }
  func.func @transform_7(%arg0: i32) -> (i32, i32, i32) {
    %c0_i32 = arith.constant 0 : i32
    %c0_i32_0 = arith.constant 0 : i32
    %c0_i32_1 = arith.constant 0 : i32
    return %arg0, %c0_i32, %c0_i32_0 : i32, i32, i32
  }
  func.func @transform_8(%arg0: i32) -> (i32, i32, i32, i32) {
    %c0_i32 = arith.constant 0 : i32
    %c0_i32_0 = arith.constant 0 : i32
    %c0_i32_1 = arith.constant 0 : i32
    %c0_i32_2 = arith.constant 0 : i32
    return %arg0, %c0_i32, %c0_i32_0, %c0_i32_1 : i32, i32, i32, i32
  }
}

</mosaic_0001>

<bundles_post_ra>
// kernel: tpu_custom_call.1
= control target key start
LH: loop header
LB: loop body
LE: loop exit
PB: predicated region body
PF: predicated region fallthrough
CT: control target
= control target key end

     0   :  { %14 = vsyncpa [#allocation3], 0  ;;  %s2853_s0 = inlined_call_operand.vmem [shape: f32[2,8,32], index: 0, kind: input, shape index: {}]   ;;  %s2854_s1 = inlined_call_operand.vmem [shape: bf16[4,32,8], index: 1, kind: input, shape index: {}]   ;;  %s2855_s2 = inlined_call_operand.vmem [shape: bf16[4,32,8], index: 2, kind: input, shape index: {}]   ;;  %s2856_s3 = inlined_call_operand.vmem [shape: bf16[4,32,8], index: 3, kind: input, shape index: {}]   ;;  %s2857_s4 = inlined_call_operand.vmem [shape: f32[4,3,8], index: 4, kind: input, shape index: {}]   ;;  %s2858_s5 = inlined_call_operand.vmem [shape: bf16[4,8,32], index: 5, kind: input, shape index: {}]   ;;  %s2859_s6 = inlined_call_operand.vmem [shape: f32[3,32], index: 6, kind: input, shape index: {}]   ;;  %s2860_s7 = inlined_call_operand.hbm [shape: f32[2,8,32], index: 7, kind: output, shape index: {0}]   ;;  %s2861_s8 = inlined_call_operand.hbm [shape: f32[2,4,8,8], index: 8, kind: output, shape index: {1}]  }
   0x1   :  { %16 = vsyncpa [#allocation3 + $0x1], 0 }
   0x2   :  { %17 = vsyncpa [#allocation5], 0 }
   0x3   :  { %19 = vsyncpa [#allocation5 + $0x1], 0  ;;  %s2420_s27 = smov 0   ;;  %s2422_s28 = smov 0  }
   0x4   :  { %s2424_s29 = smov 0   ;;  %s2426_s30 = smov 0  }
   0x5 LB: > { %s2441_s9 = sadd.s32 4294967295, %s2367_s30   ;;  %s1847_s10 = sadd.s32 4294967294, %s2367_s30   ;;  %s2367_s30 = sphi %s2426_s30, %s2867_s30   ;;  %s2363_s29 = sphi %s2424_s29, %s2866_s29   ;;  %s2359_s28 = sphi %s2422_s28, %s2865_s28   ;;  %s2355_s27 = sphi %s2420_s27, %s2864_s27  }
   0x6   : > { %s2445_s11 = sadd.s32 1, %s2367_s30   ;;  %s184_s12 = sadd.s32 1, %s2363_s29 }
   0x7   : > { %s181_s13 = ssub.s32 %s2367_s30, %s2445_s11  ;;  %p194_p0 = scmp.ne.s32.totalorder %s2363_s29, %s2359_s28 }
   0x8   : > { %p182_p1 = scmp.eq.s32.totalorder %s181_s13, 0  ;;  %p195_p2 = scmp.eq.s32.totalorder %s2441_s9, 1 }
   0x9   : > { %p200_p3 = scmp.ne.s32.totalorder %s2359_s28, %s2355_s27  ;;  %p201_p4 = scmp.eq.s32.totalorder %s1847_s10, 1 }
   0xa   : > { %s2456_s14 = scalar_select %p182_p1, %s2363_s29, %s184_s12  }
   0xb   : > { %p2458_p5 = por %p195_p2, %p194_p0  ;;  %p2462_p6 = por %p201_p4, %p200_p3 }
   0xc   : > { %p1850_p7 = scmp.ge.s32.totalorder %s2367_s30, 1  ;;  %p270_p8 = scmp.lt.s32.totalorder %s2367_s30, 3 }
   0xe   : > { %p271_p9 = pnand %p1850_p7, %p270_p8 }
   0xf   : > { %v2231_v0 = vld [vmem:[%s2855_s2] sm:$0xff] (!%p271_p9)   ;;  %v2369_v1 = vmov (!%p271_p9), 0.0   ;;  %v2232_v2 = vld [vmem:[%s2855_s2 + $0x8] sm:$0xff] (!%p271_p9)   ;;  %vm2370_vm0 = vmmov (!%p271_p9), 0   ;;  %p308_p10 = scmp.lt.s32.totalorder (!%p271_p9), %s2441_s9, 1  ;;  %vm336_vm1 = vcmask (!%p271_p9), 261120   ;;  %v320_v7 = vlaneseq (!%p271_p9) }
  0x10   : > { %274 = sbr.rel (%p271_p9) target bundleno = 4241 (0x1091), region = 48  ;;  %2023 = vmatprep.subr.bf16.mxu1 (!%p271_p9), %v2369_v1  ;;  %2015 = vmatprep.subr.bf16.mxu0 (!%p271_p9), %v2369_v1  ;;  %v2233_v3 = vld [vmem:[%s2854_s1] sm:$0xff] (!%p271_p9)   ;;  %v2234_v4 = vld [vmem:[%s2854_s1 + $0x8] sm:$0xff] (!%p271_p9)   ;;  %vm502_vm2 = vcmask (!%p271_p9), 64512   ;;  %vm566_vm3 = vcmask (!%p271_p9), 1043456   ;;  %v2239_v48 = vld [vmem:[%s2854_s1 + $0x10] sm:$0xff] (!%p271_p9)  }
  0x11   : > { %2024 = vmatpush3.bf16.msra.mxu1 (!%p271_p9), %v2231_v0  ;;  %2027 = vmatprep.mubr.msk.bf16.mxu1 (!%p271_p9), %vm2370_vm0, %v2369_v1  ;;  %v321_v8 = vshrl.u32 (!%p271_p9), %v320_v7, 7  ;;  %v315_v10 = vld [vmem:[%s2857_s4] sm:$0x7] (!%p271_p9)  ;;  %v2236_v28 = vld [vmem:[%s2856_s3 + $0x8] sm:$0xff] (!%p271_p9)   ;;  %v2240_v49 = vld [vmem:[%s2854_s1 + $0x18] sm:$0xff] (!%p271_p9)   ;;  %s2555_s10 = sand.u32 (!%p271_p9), 1, %s2359_s28  }
  0x12   : > { %2025 = vmatprep.subr.bf16.mxu1 (!%p271_p9), %v2369_v1  ;;  %2019 = vmatprep.mubr.msk.bf16.mxu0 (!%p271_p9), %vm2370_vm0, %v2369_v1  ;;  %v2235_v27 = vld [vmem:[%s2856_s3] sm:$0xff] (!%p271_p9)   ;;  %s1852_s12 = sshll.u32 (!%p271_p9), %s2555_s10, 5  ;;  %v2237_v53 = vld [vmem:[%s2855_s2 + $0x10] sm:$0xff] (!%p271_p9)   ;;  %v2238_v55 = vld [vmem:[%s2855_s2 + $0x18] sm:$0xff] (!%p271_p9)   ;;  %s1954_s22 = sshll.u32 (!%p271_p9), %s2441_s9, 9 }
  0x13   : > { %2016 = vmatpush3.bf16.msra.mxu0 (!%p271_p9), %v2233_v3  ;;  %v2509_v9 = vsub.s32 (!%p271_p9), 1, %v321_v8  ;;  %v2515_v12 = vsub.s32 (!%p271_p9), 0, %v321_v8  ;;  %v2537_v39 = vsub.s32 (!%p271_p9), 2, %v321_v8  ;;  %s2561_s18 = scalar_lea.vmem (!%p271_p9), [#allocation4], %s1852_s12  ;;  %v1865_v63 = vld [vmem:[%s2857_s4 + $0x4] sm:$0x7] (!%p271_p9)  ;;  %s2774_s25 = scalar_lea.hbm (!%p271_p9), %s2861_s8, %s1954_s22 }
  0x14   : > { %2017 = vmatprep.subr.bf16.mxu0 (!%p271_p9), %v2369_v1  ;;  %s1753_s21 = sshll.u32 (!%p271_p9), %s2561_s18, 4  ;;  %s2769_s21 = int_to_ptr.vmem [resolvable:$true] %s1753_s21 }
  0x15   : > { %2026 = vmatpush3.bf16.msra.mxu1 (!%p271_p9), %v2232_v2  ;;  %v387_v11 = vrot.slane (!%p271_p9), %v315_v10, %v2509_v9  ;;  %v323_v17 = vrot.slane (!%p271_p9), %v315_v10, %v2515_v12  ;;  %v447_v42 = vrot.slane (!%p271_p9), %v315_v10, %v2537_v39  ;;  %v683_v2 = vrot.slane (!%p271_p9), %v1865_v63, %v2509_v9  ;;  %s2273_s12 = scalar_lea.vmem (!%p271_p9), %s2769_s21, 512 }
  0x16   : > { %2039 = vmatprep.subr.bf16.mxu1 (!%p271_p9), %v2369_v1  ;;  %v622_v8 = vrot.slane (!%p271_p9), %v1865_v63, %v2515_v12  ;;  %p2274_p11 = scmp.ne.s32.totalorder (!%p271_p9), %s2769_s21, %s2273_s12 }
  0x17   : > { %s309_s23 = scalar_select %p308_p10, %s2441_s9, 1  ;;  %2018 = vmatpush3.bf16.msra.mxu0 %v2234_v4 }
  0x18   : > { %2031 = vmatprep.subr.bf16.mxu0 %v2369_v1  ;;  %p2275_p12 = pnand %p2274_p11, %p2458_p5 }
  0x19   : > { %s1853_s26 = sshll.u32 %s309_s23, 3 }
  0x1a   : > { %s311_s13 = scalar_lea.vmem %s2853_s0, %s1853_s26  ;;  %s1727_s26 = scalar_lea.sflag [#allocation5], %s2555_s10 }
  0x1b   : > { %v2494_v5 = vld [vmem:[%s311_s13] sm:$0xff]  ;;  %p2276_p13 = pneg %p2275_p12  ;;  %s2371_s13 = smov [#allocation4]  }
  0x1c   : > { %v2498_v6 = vpack.c.bf16 %v2494_v5, %v2494_v5  ;;  %s2277_s17 = sshll.u32 %s2371_s13, 4  ;;  %s2278_s17 = int_to_ptr.vmem [resolvable:$false] %s2277_s17 }
  0x1d   : > { %p2280_p0 = scmp.lt.s32.totalorder %s2769_s21, %s2278_s17 }
  0x1e   : > { %2028 = vmatmul.mubr.msk.bf16.vlgmr.msra.gmra.mrb[0].mxu1 %vm336_vm1, %v2498_v6  ;;  %2020 = vmatmul.mubr.msk.bf16.vlgmr.msra.gmra.mrb[0].mxu0 %vm336_vm1, %v2498_v6 }
  0x1f   : > { %2041 = vmatprep.mubr.msk.bf16.mxu1 %vm2370_vm0, %v2369_v1  ;;  %2035 = vmatprep.mubr.msk.bf16.mxu0 %vm2370_vm0, %v2369_v1 }
  0x20   : > { %2032 = vmatpush3.bf16.msra.mxu0 %v2235_v27 }
  0x21   : > { %2033 = vmatprep.subr.bf16.mxu0 %v2369_v1 }
  0x24   : > { %2034 = vmatpush3.bf16.msra.mxu0 %v2236_v28 }
  0x25   : > { %2045 = vmatprep.subr.bf16.mxu0 %v2369_v1 }
  0x27   : > { %2036 = vmatmul.mubr.msk.bf16.vlgmr.msra.gmra.mrb[4].mxu0 %vm336_vm1, %v2498_v6 }
  0x28   : > { %2047 = vmatprep.mubr.msk.bf16.mxu0 %vm2370_vm0, %v2369_v1 }
  0xf1   : > { %v434_v13 = vpop.f32.mrb[0].mxu1  ;;  %v374_v14 = vpop.f32.mrb[0].mxu0 }
  0xf2   : > { %v435_v15 = vadd.f32 %v434_v13, %v387_v11  ;;  %v2029_v16 = vpop.f32.mrb[1].mxu1  ;;  %v2021_v18 = vpop.f32.mrb[1].mxu0  ;;  %v375_v25 = vadd.f32 %v374_v14, %v323_v17  ;;  %v2241_v17 = vld [vmem:[%s2856_s3 + $0x10] sm:$0xff]  }
  0xf3   : > { %v437_v19 = vpop.f32.mrb[2].mxu1  ;;  %v377_v20 = vpop.f32.mrb[2].mxu0  ;;  %v2242_v18 = vld [vmem:[%s2856_s3 + $0x18] sm:$0xff]  }
  0xf4   : > { %v501_v21 = vpack.c.bf16 %v435_v15, %v435_v15  ;;  %v2030_v22 = vpop.f32.mrb[3].mxu1  ;;  %v2022_v23 = vpop.f32.mrb[3].mxu0  ;;  %v500_v26 = vpack.c.bf16 %v375_v25, %v375_v25 }
  0xf6   : > { %v507_v24 = vsel %vm502_vm2, %v501_v21, 0 }
  0xf7   : > { %2040 = vmatpush3.bf16.xpose.msra.mxu1 %v507_v24  ;;  %v744_v24 = vrot.slane %v1865_v63, %v2537_v39 }
  0xf8   : > { %2051 = vmatprep.subr.bf16.mxu1 %v2369_v1 }
  0xfa   : > { %v494_v40 = vpop.f32.mrb[4].mxu0 }
  0xfb   : > { %v2037_v41 = vpop.f32.mrb[5].mxu0  ;;  %v495_v45 = vadd.f32 %v494_v40, %v447_v42  ;;  %v611_v42 = vld [vmem:[%s2858_s5] sm:$0xf] }
  0xfc   : > { %v497_v43 = vpop.f32.mrb[6].mxu0 }
  0xfd   : > { %v2038_v44 = vpop.f32.mrb[7].mxu0  ;;  %v562_v46 = vpack.c.bf16 %v495_v45, %v495_v45  ;;  %v959_v45 = vsel %vm566_vm3, %v611_v42, 0 }
  0xfe   : > { %2042 = vmatmul.mubr.msk.bf16.vlgmr.msra.gmra.mrb[4].mxu1 %vm502_vm2, %v500_v26 }
  0xff   : > { %2055 = vmatprep.mubr.msk.bf16.mxu1 %vm2370_vm0, %v2369_v1  ;;  %v568_v47 = vsel %vm566_vm3, %v562_v46, 0  ;;  %2052 = vmatpush3.bf16.msra.mxu1 %v2239_v48  ;;  %v2243_v46 = vld [vmem:[%s2855_s2 + $0x20] sm:$0xff]   ;;  %v2244_v48 = vld [vmem:[%s2855_s2 + $0x28] sm:$0xff]  }
 0x100   : > { %2046 = vmatpush3.bf16.msra.mxu0 %v568_v47  ;;  %2053 = vmatprep.subr.bf16.mxu1 %v2369_v1 }
 0x101   : > { %2059 = vmatprep.subr.bf16.mxu0 %v2369_v1 }
 0x103   : > { %2054 = vmatpush3.bf16.msra.mxu1 %v2240_v49 }
 0x104   : > { %2067 = vmatprep.subr.bf16.mxu1 %v2369_v1 }
 0x106   : > { %2056 = vmatmul.mubr.msk.bf16.vlgmr.msra.gmra.mrb[8].mxu1 %vm336_vm1, %v2498_v6 }
 0x107   : > { %2071 = vmatprep.mubr.msk.bf16.mxu1 %vm2370_vm0, %v2369_v1  ;;  %2068 = vmatpush3.bf16.msra.mxu1 %v2241_v17 }
 0x108   : > { %2069 = vmatprep.subr.bf16.mxu1 %v2369_v1 }
 0x10b   : > { %2070 = vmatpush3.bf16.msra.mxu1 %v2242_v18 }
 0x10c   : > { %2081 = vmatprep.subr.bf16.mxu1 %v2369_v1 }
 0x10e   : > { %2072 = vmatmul.mubr.msk.bf16.vlgmr.msra.gmra.mrb[12].mxu1 %vm336_vm1, %v2498_v6 }
 0x10f   : > { %2083 = vmatprep.mubr.msk.bf16.mxu1 %vm2370_vm0, %v2369_v1 }
 0x1d1   : > { %v543_v29 = vpop.f32.mrb[4].mxu1 }
 0x1d2   : > { %v2043_v30 = vpop.f32.mrb[5].mxu1  ;;  %v549_v31 = vsel %vm502_vm2, %v543_v29, -inf }
 0x1d3   : > { %550 = vmax.xlane.f32.xlu0 %v549_v31  ;;  %v546_v32 = vpop.f32.mrb[6].mxu1 }
 0x1d4   : > { %v2044_v33 = vpop.f32.mrb[7].mxu1 }
 0x1d9   : > { %v669_v56 = vpop.f32.mrb[8].mxu1 }
 0x1da   : > { %v2057_v57 = vpop.f32.mrb[9].mxu1  ;;  %v670_v15 = vadd.f32 %v669_v56, %v622_v8 }
 0x1db   : > { %v672_v58 = vpop.f32.mrb[10].mxu1 }
 0x1dc   : > { %v2058_v59 = vpop.f32.mrb[11].mxu1  ;;  %v797_v16 = vpack.c.bf16 %v670_v15, %v670_v15 }
 0x1dd   : > { %v1893_v59 = vld [vmem:[%s2857_s4 + $0x8] sm:$0x7] }
 0x1de   : > { %v1011_v15 = vrot.slane %v1893_v59, %v2515_v12 }
 0x1e1   : > { %v791_v25 = vpop.f32.mrb[12].mxu1 }
 0x1e2   : > { %v792_v26 = vadd.f32 %v791_v25, %v744_v24  ;;  %v2073_v27 = vpop.f32.mrb[13].mxu1 }
 0x1e3   : > { %v794_v28 = vpop.f32.mrb[14].mxu1 }
 0x1e4   : > { %v2074_v30 = vpop.f32.mrb[15].mxu1 }
 0x260   : > { %v551_v34 = vpop.xlane.xlu0 %550 }
 0x261   : > { %v552_v35 = vsub.f32 %v543_v29, %v551_v34  ;;  %v859_v29 = vpack.c.bf16 %v792_v26, %v792_v26 }
 0x263   : > { %v553_v36 = vmul.f32 1.442695, %v552_v35  ;;  %v864_v31 = vsel %vm566_vm3, %v859_v29, 0 }
 0x264   : > { %2082 = vmatpush3.bf16.msra.mxu1 %v864_v31 }
 0x265   : > { %2255 = vpow2.f32 %v553_v36  ;;  %2093 = vmatprep.subr.bf16.mxu1 %v2369_v1 }
 0x26f   : > { %v2256_v37 = vpop.eup %2255 }
 0x270   : > { %v555_v38 = vsel %vm502_vm2, %v2256_v37, 0.0 }
 0x271   : > { %556 = vadd.xlane.f32.xlu0 %v555_v38 }
 0x2fe   : > { %v557_v50 = vpop.xlane.xlu0 %556 }
 0x2ff   : > { %2257 = vrcp.f32 %v557_v50  ;;  %v2245_v50 = vld [vmem:[%s2854_s1 + $0x20] sm:$0xff]  }
 0x309   : > { %v2258_v51 = vpop.eup %2257 }
 0x30a   : > { %v559_v52 = vmul.f32 %v2258_v51, %v2256_v37  ;;  %v1890_v37 = vld [vmem:[%s2858_s5 + $0x4] sm:$0xf] }
 0x30b   : > { %v913_v38 = vsel %vm566_vm3, %v1890_v37, 0 }
 0x30c   : > { %v561_v54 = vpack.c.bf16 %v559_v52, %v559_v52  ;;  %560 = vst.msk [vmem:[%s2561_s18] sm:$0xff] %vm502_vm2, %v559_v52 }
 0x30e   : > { %2048 = vmatmul.mubr.msk.bf16.vlgmr.msra.gmra.mrb[8].mxu0 %vm502_vm2, %v561_v54 }
 0x30f   : > { %2060 = vmatpush3.bf16.msra.mxu0 %v2237_v53  ;;  %2063 = vmatprep.mubr.msk.bf16.mxu0 %vm2370_vm0, %v2369_v1 }
 0x310   : > { %2061 = vmatprep.subr.bf16.mxu0 %v2369_v1 }
 0x313   : > { %2062 = vmatpush3.bf16.msra.mxu0 %v2238_v55  ;;  %v2246_v55 = vld [vmem:[%s2854_s1 + $0x28] sm:$0xff]  }
 0x314   : > { %2075 = vmatprep.subr.bf16.mxu0 %v2369_v1 }
 0x316   : > { %2064 = vmatmul.mubr.msk.bf16.vlgmr.msra.gmra.mrb[12].mxu0 %vm336_vm1, %v2498_v6 }
 0x317   : > { %2077 = vmatprep.mubr.msk.bf16.mxu0 %vm2370_vm0, %v2369_v1 }
 0x3e1   : > { %v2577_v60 = vpop.f32.mrb[8].mxu0 }
 0x3e2   : > { %v2049_v61 = vpop.f32.mrb[9].mxu0  ;;  %v610_v47 = vpack.c.bf16 %v2577_v60, %v2577_v60 }
 0x3e3   : > { %v607_v62 = vpop.f32.mrb[10].mxu0  ;;  %v1072_v61 = vrot.slane %v1893_v59, %v2509_v9 }
 0x3e4   : > { %v2050_v0 = vpop.f32.mrb[11].mxu0 }
 0x3e9   : > { %v730_v3 = vpop.f32.mrb[12].mxu0 }
 0x3ea   : > { %v731_v4 = vadd.f32 %v730_v3, %v683_v2  ;;  %v2065_v7 = vpop.f32.mrb[13].mxu0 }
 0x3eb   : > { %v733_v10 = vpop.f32.mrb[14].mxu0 }
 0x3ec   : > { %v798_v11 = vpack.c.bf16 %v731_v4, %v731_v4  ;;  %v2066_v13 = vpop.f32.mrb[15].mxu0 }
 0x3ee   : > { %v803_v14 = vsel %vm502_vm2, %v798_v11, 0 }
 0x3ef   : > { %2076 = vmatpush3.bf16.xpose.msra.mxu0 %v803_v14 }
 0x3f0   : > { %2087 = vmatprep.subr.bf16.mxu0 %v2369_v1 }
 0x3f6   : > { %2078 = vmatmul.mubr.msk.bf16.vlgmr.msra.gmra.mrb[16].mxu0 %vm502_vm2, %v797_v16 }
 0x3f7   : > { %2089 = vmatprep.mubr.msk.bf16.mxu0 %vm2370_vm0, %v2369_v1  ;;  %2088 = vmatpush3.bf16.msra.mxu0 %v913_v38 }
 0x3f8   : > { %2099 = vmatprep.subr.bf16.mxu0 %v2369_v1 }
 0x4c9   : > { %v839_v19 = vpop.f32.mrb[16].mxu0 }
 0x4ca   : > { %v2079_v20 = vpop.f32.mrb[17].mxu0  ;;  %v845_v21 = vsel %vm502_vm2, %v839_v19, -inf }
 0x4cb   : > { %846 = vmax.xlane.f32.xlu1 %v845_v21  ;;  %v842_v22 = vpop.f32.mrb[18].mxu0 }
 0x4cc   : > { %v2080_v23 = vpop.f32.mrb[19].mxu0  ;;  %v2247_v22 = vld [vmem:[%s2856_s3 + $0x20] sm:$0xff]  }
 0x4cd   : > { %v2248_v23 = vld [vmem:[%s2856_s3 + $0x28] sm:$0xff]  }
 0x558   : > { %v847_v32 = vpop.xlane.xlu1 %846 }
 0x559   : > { %v848_v33 = vsub.f32 %v839_v19, %v847_v32 }
 0x55b   : > { %v849_v34 = vmul.f32 1.442695, %v848_v33 }
 0x55d   : > { %2259 = vpow2.f32 %v849_v34 }
 0x567   : > { %v2260_v35 = vpop.eup %2259 }
 0x568   : > { %v851_v36 = vsel %vm502_vm2, %v2260_v35, 0.0 }
 0x569   : > { %852 = vadd.xlane.f32.xlu1 %v851_v36  ;;  %v1133_v36 = vrot.slane %v1893_v59, %v2537_v39 }
 0x5f6   : > { %v853_v40 = vpop.xlane.xlu1 %852 }
 0x5f7   : > { %2261 = vrcp.f32 %v853_v40 }
 0x601   : > { %v2262_v41 = vpop.eup %2261 }
 0x602   : > { %v855_v43 = vmul.f32 %v2262_v41, %v2260_v35 }
 0x604   : > { %v858_v44 = vpack.c.bf16 %v855_v43, %v855_v43  ;;  %1888 = vst.msk [vmem:[%s2561_s18 + $0x8] sm:$0xff] %vm502_vm2, %v855_v43  ;;  %v1918_v43 = vld [vmem:[%s2858_s5 + $0x8] sm:$0xf] }
 0x606   : > { %2084 = vmatmul.mubr.msk.bf16.vlgmr.msra.gmra.mrb[16].mxu1 %vm502_vm2, %v858_v44  ;;  %v1302_v44 = vsel %vm566_vm3, %v1918_v43, 0 }
 0x607   : > { %2094 = vmatpush3.bf16.msra.mxu1 %v959_v45  ;;  %2095 = vmatprep.mubr.msk.bf16.mxu1 %vm2370_vm0, %v2369_v1 }
 0x608   : > { %2107 = vmatprep.subr.bf16.mxu1 %v2369_v1 }
 0x60e   : > { %2096 = vmatmul.mubr.msk.bf16.vlgmr.msra.gmra.mrb[20].mxu1 %vm502_vm2, %v610_v47 }
 0x60f   : > { %2108 = vmatpush3.bf16.msra.mxu1 %v2243_v46  ;;  %2111 = vmatprep.mubr.msk.bf16.mxu1 %vm2370_vm0, %v2369_v1 }
 0x610   : > { %2109 = vmatprep.subr.bf16.mxu1 %v2369_v1 }
 0x613   : > { %2110 = vmatpush3.bf16.msra.mxu1 %v2244_v48 }
 0x614   : > { %2123 = vmatprep.subr.bf16.mxu1 %v2369_v1 }
 0x616   : > { %2112 = vmatmul.mubr.msk.bf16.vlgmr.msra.gmra.mrb[24].mxu1 %vm336_vm1, %v2498_v6 }
 0x617   : > { %2125 = vmatprep.mubr.msk.bf16.mxu1 %vm2370_vm0, %v2369_v1 }
 0x6d9   : > { %v900_v49 = vpop.f32.mrb[16].mxu1 }
 0x6da   : > { %v906_v51 = vpack.c.bf16 %v900_v49, %v900_v49  ;;  %v2085_v52 = vpop.f32.mrb[17].mxu1  ;;  %v2251_v49 = vld [vmem:[%s2854_s1 + $0x30] sm:$0xff]  }
 0x6db   : > { %v903_v53 = vpop.f32.mrb[18].mxu1  ;;  %v2249_v52 = vld [vmem:[%s2855_s2 + $0x30] sm:$0xff]  }
 0x6dc   : > { %v2086_v54 = vpop.f32.mrb[19].mxu1  ;;  %2090 = vmatmul.mubr.msk.bf16.vlgmr.msra.gmra.mrb[20].mxu0 %vm502_vm2, %v906_v51 }
 0x6dd   : > { %2100 = vmatpush3.bf16.msra.mxu0 %v2245_v50  ;;  %2103 = vmatprep.mubr.msk.bf16.mxu0 %vm2370_vm0, %v2369_v1  ;;  %v2252_v50 = vld [vmem:[%s2854_s1 + $0x38] sm:$0xff]  }
 0x6de   : > { %2101 = vmatprep.subr.bf16.mxu0 %v2369_v1 }
 0x6e1   : > { %v995_v56 = vpop.f32.mrb[20].mxu1  ;;  %2102 = vmatpush3.bf16.msra.mxu0 %v2246_v55 }
 0x6e2   : > { %v2097_v57 = vpop.f32.mrb[21].mxu1  ;;  %2115 = vmatprep.subr.bf16.mxu0 %v2369_v1 }
 0x6e3   : > { %v998_v58 = vpop.f32.mrb[22].mxu1  ;;  %v2250_v57 = vld [vmem:[%s2855_s2 + $0x38] sm:$0xff]  }
 0x6e4   : > { %v2098_v60 = vpop.f32.mrb[23].mxu1  ;;  %2104 = vmatmul.mubr.msk.bf16.vlgmr.msra.gmra.mrb[24].mxu0 %vm336_vm1, %v2498_v6 }
 0x6e5   : > { %2119 = vmatprep.mubr.msk.bf16.mxu0 %vm2370_vm0, %v2369_v1  ;;  %2116 = vmatpush3.bf16.msra.mxu0 %v2247_v22 }
 0x6e6   : > { %2117 = vmatprep.subr.bf16.mxu0 %v2369_v1 }
 0x6e9   : > { %v1119_v62 = vpop.f32.mrb[24].mxu1  ;;  %2118 = vmatpush3.bf16.msra.mxu0 %v2248_v23 }
 0x6ea   : > { %v1120_v63 = vadd.f32 %v1119_v62, %v1072_v61  ;;  %v2113_v0 = vpop.f32.mrb[25].mxu1  ;;  %2129 = vmatprep.subr.bf16.mxu0 %v2369_v1 }
 0x6eb   : > { %v1122_v2 = vpop.f32.mrb[26].mxu1 }
 0x6ec   : > { %v1187_v3 = vpack.c.bf16 %v1120_v63, %v1120_v63  ;;  %v2114_v4 = vpop.f32.mrb[27].mxu1  ;;  %2120 = vmatmul.mubr.msk.bf16.vlgmr.msra.gmra.mrb[28].mxu0 %vm336_vm1, %v2498_v6 }
 0x6ed   : > { %2131 = vmatprep.mubr.msk.bf16.mxu0 %vm2370_vm0, %v2369_v1 }
 0x6ee   : > { %v1192_v7 = vsel %vm502_vm2, %v1187_v3, 0  ;;  %v1920_v3 = vld [vmem:[%s2857_s4 + $0xc] sm:$0x7] }
 0x6ef   : > { %2124 = vmatpush3.bf16.xpose.msra.mxu1 %v1192_v7  ;;  %v1416_v7 = vrot.slane %v1920_v3, %v2509_v9 }
 0x6f0   : > { %2135 = vmatprep.subr.bf16.mxu1 %v2369_v1 }
 0x7af   : > { %v949_v8 = vpop.f32.mrb[20].mxu0 }
 0x7b0   : > { %v2659_v10 = vadd.f32 %v995_v56, %v949_v8  ;;  %v2091_v11 = vpop.f32.mrb[21].mxu0 }
 0x7b1   : > { %v952_v13 = vpop.f32.mrb[22].mxu0 }
 0x7b2   : > { %v2092_v14 = vpop.f32.mrb[23].mxu0 }
 0x7b3   : > { %v1355_v14 = vrot.slane %v1920_v3, %v2515_v12 }
 0x7b7   : > { %v1058_v16 = vpop.f32.mrb[24].mxu0 }
 0x7b8   : > { %v1059_v17 = vadd.f32 %v1058_v16, %v1011_v15  ;;  %v2105_v18 = vpop.f32.mrb[25].mxu0 }
 0x7b9   : > { %v1061_v19 = vpop.f32.mrb[26].mxu0 }
 0x7ba   : > { %v1186_v20 = vpack.c.bf16 %v1059_v17, %v1059_v17  ;;  %v2106_v21 = vpop.f32.mrb[27].mxu0 }
 0x7bb   : > { %v2254_v21 = vld [vmem:[%s2856_s3 + $0x38] sm:$0xff]  }
 0x7bc   : > { %2126 = vmatmul.mubr.msk.bf16.vlgmr.msra.gmra.mrb[28].mxu1 %vm502_vm2, %v1186_v20  ;;  %v2253_v20 = vld [vmem:[%s2856_s3 + $0x30] sm:$0xff]  }
 0x7bd   : > { %2137 = vmatprep.mubr.msk.bf16.mxu1 %vm2370_vm0, %v2369_v1  ;;  %2136 = vmatpush3.bf16.msra.mxu1 %v1302_v44 }
 0x7be   : > { %2149 = vmatprep.subr.bf16.mxu1 %v2369_v1 }
 0x7bf   : > { %v1180_v34 = vpop.f32.mrb[28].mxu0 }
 0x7c0   : > { %v2121_v35 = vpop.f32.mrb[29].mxu0  ;;  %v1181_v40 = vadd.f32 %v1180_v34, %v1133_v36 }
 0x7c1   : > { %v1183_v37 = vpop.f32.mrb[30].mxu0 }
 0x7c2   : > { %v2122_v38 = vpop.f32.mrb[31].mxu0  ;;  %v1248_v41 = vpack.c.bf16 %v1181_v40, %v1181_v40 }
 0x7c3   : > { %v1945_v38 = vld [vmem:[%s2858_s5 + $0xc] sm:$0xf] }
 0x7c4   : > { %v1253_v42 = vsel %vm566_vm3, %v1248_v41, 0  ;;  %v1646_v40 = vsel %vm566_vm3, %v1945_v38, 0 }
 0x7c5   : > { %2130 = vmatpush3.bf16.msra.mxu0 %v1253_v42 }
 0x7c6   : > { %2141 = vmatprep.subr.bf16.mxu0 %v2369_v1 }
 0x88f   : > { %v1228_v24 = vpop.f32.mrb[28].mxu1 }
 0x890   : > { %v2127_v25 = vpop.f32.mrb[29].mxu1  ;;  %v1234_v26 = vsel %vm502_vm2, %v1228_v24, -inf }
 0x891   : > { %1235 = vmax.xlane.f32.xlu0 %v1234_v26  ;;  %v1231_v27 = vpop.f32.mrb[30].mxu1 }
 0x892   : > { %v2128_v28 = vpop.f32.mrb[31].mxu1 }
 0x91e   : > { %v1236_v29 = vpop.xlane.xlu0 %1235 }
 0x91f   : > { %v1237_v30 = vsub.f32 %v1228_v24, %v1236_v29 }
 0x921   : > { %v1238_v31 = vmul.f32 1.442695, %v1237_v30 }
 0x923   : > { %2263 = vpow2.f32 %v1238_v31 }
 0x92d   : > { %v2264_v32 = vpop.eup %2263 }
 0x92e   : > { %v1240_v33 = vsel %vm502_vm2, %v2264_v32, 0.0 }
 0x92f   : > { %1241 = vadd.xlane.f32.xlu1 %v1240_v33 }
 0x9bc   : > { %v1242_v45 = vpop.xlane.xlu1 %1241 }
 0x9bd   : > { %2265 = vrcp.f32 %v1242_v45 }
 0x9c7   : > { %v2266_v46 = vpop.eup %2265 }
 0x9c8   : > { %v1244_v47 = vmul.f32 %v2266_v46, %v2264_v32 }
 0x9ca   : > { %v1247_v48 = vpack.c.bf16 %v1244_v47, %v1244_v47  ;;  %1916 = vst.msk [vmem:[%s2561_s18 + $0x10] sm:$0xff] %vm502_vm2, %v1244_v47 }
 0x9cc   : > { %2132 = vmatmul.mubr.msk.bf16.vlgmr.msra.gmra.mrb[32].mxu0 %vm502_vm2, %v1247_v48 }
 0x9cd   : > { %2145 = vmatprep.mubr.msk.bf16.mxu0 %vm2370_vm0, %v2369_v1  ;;  %2142 = vmatpush3.bf16.msra.mxu0 %v2251_v49 }
 0x9ce   : > { %2143 = vmatprep.subr.bf16.mxu0 %v2369_v1 }
 0x9d1   : > { %2144 = vmatpush3.bf16.msra.mxu0 %v2252_v50  ;;  %v2759_v50 = vld [vmem:[%s2859_s6] sm:$0x7] }
 0x9d2   : > { %2157 = vmatprep.subr.bf16.mxu0 %v2369_v1 }
 0x9d4   : > { %2146 = vmatmul.mubr.msk.bf16.vlgmr.msra.gmra.mrb[36].mxu0 %vm336_vm1, %v2498_v6 }
 0x9d5   : > { %2161 = vmatprep.mubr.msk.bf16.mxu0 %vm2370_vm0, %v2369_v1  ;;  %2158 = vmatpush3.bf16.msra.mxu0 %v2253_v20 }
 0x9d6   : > { %2159 = vmatprep.subr.bf16.mxu0 %v2369_v1 }
 0x9d9   : > { %2160 = vmatpush3.bf16.msra.mxu0 %v2254_v21 }
 0x9da   : > { %2171 = vmatprep.subr.bf16.mxu0 %v2369_v1 }
 0x9dc   : > { %2162 = vmatmul.mubr.msk.bf16.vlgmr.msra.gmra.mrb[40].mxu0 %vm336_vm1, %v2498_v6 }
 0x9dd   : > { %2173 = vmatprep.mubr.msk.bf16.mxu0 %vm2370_vm0, %v2369_v1 }
 0xa9f   : > { %v1289_v51 = vpop.f32.mrb[32].mxu0 }
 0xaa0   : > { %v1295_v53 = vpack.c.bf16 %v1289_v51, %v1289_v51  ;;  %v2133_v54 = vpop.f32.mrb[33].mxu0 }
 0xaa1   : > { %v1292_v55 = vpop.f32.mrb[34].mxu0  ;;  %v1694_v54 = vrot.slane %v2759_v50, %v2515_v12 }
 0xaa2   : > { %v2134_v56 = vpop.f32.mrb[35].mxu0  ;;  %2138 = vmatmul.mubr.msk.bf16.vlgmr.msra.gmra.mrb[32].mxu1 %vm502_vm2, %v1295_v53 }
 0xaa3   : > { %2150 = vmatpush3.bf16.msra.mxu1 %v2249_v52  ;;  %2153 = vmatprep.mubr.msk.bf16.mxu1 %vm2370_vm0, %v2369_v1 }
 0xaa4   : > { %2151 = vmatprep.subr.bf16.mxu1 %v2369_v1 }
 0xaa7   : > { %2152 = vmatpush3.bf16.msra.mxu1 %v2250_v57  ;;  %v1402_v58 = vpop.f32.mrb[36].mxu0 }
 0xaa8   : > { %2165 = vmatprep.subr.bf16.mxu1 %v2369_v1  ;;  %v2147_v59 = vpop.f32.mrb[37].mxu0  ;;  %v1403_v18 = vadd.f32 %v1402_v58, %v1355_v14 }
 0xaa9   : > { %v1405_v60 = vpop.f32.mrb[38].mxu0 }
 0xaaa   : > { %2154 = vmatmul.mubr.msk.bf16.vlgmr.msra.gmra.mrb[36].mxu1 %vm336_vm1, %v2498_v6  ;;  %v2148_v61 = vpop.f32.mrb[39].mxu0  ;;  %v1530_v19 = vpack.c.bf16 %v1403_v18, %v1403_v18 }
 0xaab   : > { %2167 = vmatprep.mubr.msk.bf16.mxu1 %vm2370_vm0, %v2369_v1 }
 0xaaf   : > { %v1524_v32 = vpop.f32.mrb[40].mxu0 }
 0xab0   : > { %v2163_v6 = vpop.f32.mrb[41].mxu0 }
 0xab1   : > { %v1527_v33 = vpop.f32.mrb[42].mxu0 }
 0xab2   : > { %v2164_v34 = vpop.f32.mrb[43].mxu0 }
 0xb75   : > { %v1338_v62 = vpop.f32.mrb[32].mxu1 }
 0xb76   : > { %v2720_v63 = vadd.f32 %v1338_v62, %v2659_v10  ;;  %v2139_v0 = vpop.f32.mrb[33].mxu1 }
 0xb77   : > { %v1341_v2 = vpop.f32.mrb[34].mxu1 }
 0xb78   : > { %v2140_v4 = vpop.f32.mrb[35].mxu1 }
 0xb7d   : > { %v1463_v8 = vpop.f32.mrb[36].mxu1 }
 0xb7e   : > { %v1464_v11 = vadd.f32 %v1463_v8, %v1416_v7  ;;  %v2155_v13 = vpop.f32.mrb[37].mxu1 }
 0xb7f   : > { %v1466_v15 = vpop.f32.mrb[38].mxu1 }
 0xb80   : > { %v1531_v16 = vpack.c.bf16 %v1464_v11, %v1464_v11  ;;  %v2156_v17 = vpop.f32.mrb[39].mxu1 }
 0xb82   : > { %v1536_v10 = vsel %vm502_vm2, %v1531_v16, 0 }
 0xb83   : > { %2166 = vmatpush3.bf16.xpose.msra.mxu1 %v1536_v10 }
 0xb84   : > { %2177 = vmatprep.subr.bf16.mxu1 %v2369_v1 }
 0xb8a   : > { %2168 = vmatmul.mubr.msk.bf16.vlgmr.msra.gmra.mrb[40].mxu1 %vm502_vm2, %v1530_v19 }
 0xb8b   : > { %2179 = vmatprep.mubr.msk.bf16.mxu1 %vm2370_vm0, %v2369_v1  ;;  %v1477_v1 = vrot.slane %v1920_v3, %v2537_v39  ;;  %2178 = vmatpush3.bf16.msra.mxu1 %v1646_v40 }
 0xb8d   : > { %v1525_v35 = vadd.f32 %v1524_v32, %v1477_v1 }
 0xb8f   : > { %v1592_v36 = vpack.c.bf16 %v1525_v35, %v1525_v35 }
 0xb91   : > { %v1597_v37 = vsel %vm566_vm3, %v1592_v36, 0 }
 0xb92   : > { %2172 = vmatpush3.bf16.msra.mxu0 %v1597_v37 }
 0xc5d   : > { %v1572_v22 = vpop.f32.mrb[40].mxu1 }
 0xc5e   : > { %v2169_v23 = vpop.f32.mrb[41].mxu1  ;;  %v1578_v24 = vsel %vm502_vm2, %v1572_v22, -inf }
 0xc5f   : > { %1579 = vmax.xlane.f32.xlu0 %v1578_v24  ;;  %v1575_v25 = vpop.f32.mrb[42].mxu1 }
 0xc60   : > { %v2170_v26 = vpop.f32.mrb[43].mxu1 }
 0xcec   : > { %v1580_v27 = vpop.xlane.xlu0 %1579 }
 0xced   : > { %v1581_v28 = vsub.f32 %v1572_v22, %v1580_v27 }
 0xcef   : > { %v1582_v29 = vmul.f32 1.442695, %v1581_v28 }
 0xcf1   : > { %2267 = vpow2.f32 %v1582_v29 }
 0xcfb   : > { %v2268_v30 = vpop.eup %2267 }
 0xcfc   : > { %v1584_v31 = vsel %vm502_vm2, %v2268_v30, 0.0 }
 0xcfd   : > { %1585 = vadd.xlane.f32.xlu1 %v1584_v31 }
 0xd8a   : > { %v1586_v41 = vpop.xlane.xlu1 %1585 }
 0xd8b   : > { %2269 = vrcp.f32 %v1586_v41 }
 0xd95   : > { %v2270_v42 = vpop.eup %2269 }
 0xd96   : > { %v1588_v43 = vmul.f32 %v2270_v42, %v2268_v30 }
 0xd98   : > { %v1591_v44 = vpack.c.bf16 %v1588_v43, %v1588_v43  ;;  %1943 = vst.msk [vmem:[%s2561_s18 + $0x18] sm:$0xff] %vm502_vm2, %v1588_v43  ;;  %s2279_s18 = scalar_lea.vmem %s2278_s17, 1024 }
 0xd99   : > { %p2281_p1 = scmp.lt.s32.totalorder %s2279_s18, %s2273_s12 }
 0xd9a   : > { %2174 = vmatmul.mubr.msk.bf16.vlgmr.msra.gmra.mrb[44].mxu0 %vm502_vm2, %v1591_v44 }
 0xd9b   : > { %p2282_p2 = por %p2281_p1, %p2280_p0 }
 0xd9d   : > { %p2283_p3 = pnand %p2282_p2, %p2276_p13 }
 0xe6d   : > { %v1633_v45 = vpop.f32.mrb[44].mxu0 }
 0xe6e   : > { %v1639_v46 = vpack.c.bf16 %v1633_v45, %v1633_v45  ;;  %v2175_v47 = vpop.f32.mrb[45].mxu0 }
 0xe6f   : > { %v1636_v48 = vpop.f32.mrb[46].mxu0 }
 0xe70   : > { %v2176_v49 = vpop.f32.mrb[47].mxu0  ;;  %2180 = vmatmul.mubr.msk.bf16.vlgmr.msra.gmra.mrb[44].mxu1 %vm502_vm2, %v1639_v46 }
 0xf43   : > { %v1682_v51 = vpop.f32.mrb[44].mxu1 }
 0xf44   : > { %v1688_v52 = vadd.f32 %v1682_v51, %v2720_v63  ;;  %v2181_v53 = vpop.f32.mrb[45].mxu1 }
 0xf45   : > { %v1685_v55 = vpop.f32.mrb[46].mxu1 }
 0xf46   : > { %v1690_v56 = vadd.f32 %v1688_v52, %v2494_v5  ;;  %v2182_v57 = vpop.f32.mrb[47].mxu1 }
 0xf48   : > { %v1695_v58 = vadd.f32 %v1694_v54, %v1690_v56 }
 0xf4a   : > { %v1696_v59 = vsel %vm336_vm1, %v1695_v58, 0.0 }
 0xf4b   : > { %1697 = vadd.xlane.f32.xlu0 %v1696_v59 }
 0xfd8   : > { %v1698_v60 = vpop.xlane.xlu0 %1697 }
 0xfd9   : > { %v1700_v61 = vmul.f32 0.03125, %v1698_v60 }
 0xfdb   : > { %v1701_v62 = vsub.f32 %v1695_v58, %v1700_v61 }
 0xfdd   : > { %v1702_v0 = vmul.f32 %v1701_v62, %v1701_v62 }
 0xfdf   : > { %v1703_v63 = vsel %vm336_vm1, %v1702_v0, 0.0 }
 0xfe0   : > { %1704 = vadd.xlane.f32.xlu1 %v1703_v63 }
 0xfe1   : > { %2286 = shalt.err (!%p2283_p3)
}
 0xfe2   : > { %s2287_s19 = scalar_lea.hbm %s2774_s25, 512  ;;  %s2291_s23 = scalar_lea.hbm %s2861_s8, 1024 }
 0xfe3   : > { %p2288_p4 = scmp.ne.s32.totalorder %s2774_s25, %s2287_s19  ;;  %p2292_p9 = scmp.lt.u32.totalorder %s2774_s25, %s2861_s8 }
 0xfe4   : > { %p2293_p10 = scmp.lt.u32.totalorder %s2291_s23, %s2287_s19  ;;  %p2295_p12 = scmp.lt.u32.totalorder %s2287_s19, %s2774_s25 }
 0xfe5   : > { %p2289_p7 = pnand %p2288_p4, %p2458_p5 }
 0xfe6   : > { %p2294_p11 = por %p2293_p10, %p2292_p9 }
 0xfe7   : > { %p2290_p8 = pneg %p2289_p7 }
 0xfe8   : > { %p2296_p13 = por %p2295_p12, %p2294_p11 }
 0xfea   : > { %p2297_p0 = pnand %p2296_p13, %p2290_p8 }
 0xfec   : > { %2300 = shalt.err (!%p2297_p0)
}
 0xfed   : > { %s2372_s12 = smov 128   ;;  %s2373_s17 = smov 8   ;;  %v1713_v3 = vrot.slane %v2759_v50, %v2509_v9  ;;  %v1718_v7 = vrot.slane %v2759_v50, %v2537_v39 }
 0xfee   : > { %2184 = dma.vmem_to_hbm [thread:$0]  (%p2458_p5), %s2769_s21, 512, %s2774_s25, %s1727_s26, %s2372_s12, %s2372_s12, %s2373_s17  }
 0xfef   : > { %s1851_s18 = sshll.u32 %s2555_s10, 3  ;;  %s1949_s19 = sshll.u32 %s2441_s9, 7 }
 0xff0   : > { %s300_s20 = scalar_lea.vmem [#allocation2], %s1851_s18  ;;  %s2809_s26 = scalar_lea.hbm %s2860_s7, %s1949_s19 }
 0xff1   : > { %s1740_s22 = sshll.u32 %s300_s20, 4  ;;  %s1722_s23 = scalar_lea.sflag [#allocation3], %s2555_s10  ;;  %s2811_s22 = int_to_ptr.vmem [resolvable:$true] %s1740_s22 }
 0xff2   : > { %s2301_s24 = scalar_lea.vmem %s2811_s22, 128  ;;  %s2374_s9 = smov [#allocation2]  }
 0xff3   : > { %p2302_p1 = scmp.ne.s32.totalorder %s2811_s22, %s2301_s24  ;;  %s2305_s13 = sshll.u32 %s2374_s9, 4  ;;  %s2306_s13 = int_to_ptr.vmem [resolvable:$false] %s2305_s13 }
 0xff4   : > { %s2307_s12 = scalar_lea.vmem %s2306_s13, 256  ;;  %p2308_p4 = scmp.lt.s32.totalorder %s2811_s22, %s2306_s13 }
 0xff5   : > { %p2303_p2 = pnand %p2302_p1, %p2458_p5  ;;  %p2309_p7 = scmp.lt.s32.totalorder %s2307_s12, %s2301_s24 }
 0xff7   : > { %p2304_p3 = pneg %p2303_p2  ;;  %p2310_p8 = por %p2309_p7, %p2308_p4 }
 0xff9   : > { %p2311_p9 = pnand %p2310_p8, %p2304_p3 }
0x106d   : > { %v1705_v5 = vpop.xlane.xlu1 %1704 }
0x106e   : > { %v1706_v12 = vmul.f32 0.03125, %v1705_v5 }
0x1070   : > { %v1707_v2 = vadd.f32 1e-05, %v1706_v12 }
0x1072   : > { %2271 = vrsqrt.f32 %v1707_v2 }
0x107c   : > { %v2272_v4 = vpop.eup %2271 }
0x107d   : > { %v1709_v8 = vmul.f32 %v2272_v4, %v1701_v62 }
0x107f   : > { %v1714_v11 = vmul.f32 %v1713_v3, %v1709_v8 }
0x1081   : > { %v1719_v13 = vadd.f32 %v1718_v7, %v1714_v11 }
0x1083   : > { %1720 = vst.msk [vmem:[%s300_s20] sm:$0xff] %vm336_vm1, %v1719_v13 }
0x1084   : > { %2314 = shalt.err (!%p2311_p9)
}
0x1085   : > { %s2315_s10 = scalar_lea.hbm %s2809_s26, 128  ;;  %s2319_s19 = scalar_lea.hbm %s2860_s7, 256 }
0x1086   : > { %p2316_p10 = scmp.ne.s32.totalorder %s2809_s26, %s2315_s10  ;;  %p2320_p13 = scmp.lt.u32.totalorder %s2809_s26, %s2860_s7 }
0x1087   : > { %p2321_p0 = scmp.lt.u32.totalorder %s2319_s19, %s2315_s10  ;;  %p2323_p2 = scmp.lt.u32.totalorder %s2315_s10, %s2809_s26 }
0x1088   : > { %p2317_p11 = pnand %p2316_p10, %p2458_p5 }
0x1089   : > { %p2322_p1 = por %p2321_p0, %p2320_p13 }
0x108a   : > { %p2318_p12 = pneg %p2317_p11 }
0x108b   : > { %p2324_p3 = por %p2323_p2, %p2322_p1 }
0x108d   : > { %p2325_p4 = pnand %p2324_p3, %p2318_p12 }
0x108f   : > { %2328 = shalt.err (!%p2325_p4)
}
0x1090   : > { %2183 = dma.vmem_to_hbm [thread:$0]  (%p2458_p5), %s2811_s22, 128, %s2809_s26, %s1722_s23  }
0x1091 PF: > { %p2194_p7 = scmp.ge.s32.totalorder %s2367_s30, 2  ;;  %s1768_s25 = sand.u32 1, %s2355_s27  }
0x1092   : > { %s1769_s24 = scalar_lea.sflag [#allocation3], %s1768_s25 }
0x1093   : > { %p2188_p8 = pnand %p2194_p7, %p2462_p6 }
0x1095   : > { %2346 = dma.done.wait (!%p2188_p8), %s1769_s24, 128  }
0x1096   : > { %2348 = vsyncadd (!%p2188_p8), %s1769_s24, 4294967168  ;;  %s1778_s9 = scalar_lea.sflag [#allocation5], %s1768_s25 }
0x1097   : > { %2350 = dma.done.wait (!%p2188_p8), %s1778_s9, 512  }
0x1098   : > { %2352 = vsyncadd (!%p2188_p8), %s1778_s9, 4294966784  ;;  %p22_p5 = scmp.ge.s32.totalorder %s2445_s11, 4   ;;  %s2864_s27 = smov %s2359_s28 }
0x1099   : > { %s2865_s28 = smov %s2363_s29  ;;  %s2866_s29 = smov %s2456_s14 }
0x109a   : > { %s2867_s30 = smov %s2445_s11  ;;  %24 = sbr.rel (!%p22_p5) target bundleno = 5 (0x5), region = 118 }
0x10a1   :  { %1783 = vsyncpa [#allocation3], 1 }
0x10a2   :  { %1785 = vsyncpa [#allocation3 + $0x1], 1 }
0x10a3   :  { %1786 = vsyncpa [#allocation5], 1 }
0x10a4   :  { %1788 = vsyncpa [#allocation5 + $0x1], 1 }

</bundles_post_ra>
